<compile_context>
chip_gen: v7x
topology: tpu7x:2x2x1
jax: 0.10.0
libtpu: 0.0.40
codegen_flags: <defaults>
</compile_context>

<pallas_src>
import functools

import jax
import jax.numpy as jnp
from jax import lax
from jax.experimental import pallas as pl
from jax.experimental.pallas import tpu as pltpu


# ----------------------------------------------------------------------------
# Fused encoder kernel: conv1 + ReLU + (in-kernel im2col) conv2 + ReLU + conv3
# ----------------------------------------------------------------------------
def _encoder_kernel(p1_ref, w1_ref, b1_ref, w2_ref, b2_ref, w3_ref, b3_ref,
                    out_ref, hp_ref, *, batch, h1s, w1s, h2s, w2s, kh, kw):
    f32 = jnp.float32
    bf16 = jnp.bfloat16

    # ---- conv1: (M1, kh*kw*Cin) @ (kh*kw*Cin, C1) + b1, ReLU.  rows = (n, oy, ox)
    h1 = jnp.dot(p1_ref[...].astype(bf16), w1_ref[...], preferred_element_type=f32)
    h1 = jnp.maximum(h1 + b1_ref[...], 0.0)                      # (M1, C1) f32

    # ---- scatter conv1 output into a zero-padded VMEM scratch (pad=1 on H, W).
    # hp rows are (n, yp, xp) flattened; channels live on lanes.
    HP, WP = h1s + 2, w1s + 2
    hp_ref[...] = jnp.zeros_like(hp_ref)
    for b in range(batch):
        for y in range(h1s):
            src = b * h1s * w1s + y * w1s
            dst = b * HP * WP + (y + 1) * WP + 1
            hp_ref[pl.ds(dst, w1s), :] = h1[src:src + w1s, :]

    # ---- in-kernel im2col for conv2 (4x4, stride 2, pad 1) via static ref slices.
    # For tap (ki, kj) and output row oy, the needed padded columns are
    # xp = kj + 2*ox (ox = 0..w2s-1): a stride-2 sublane read of the 2-D scratch.
    row_blocks = []
    for b in range(batch):
        for oy in range(h2s):
            taps = []
            for ki in range(kh):
                for kj in range(kw):
                    start = b * HP * WP + (2 * oy + ki) * WP + kj
                    taps.append(hp_ref[pl.ds(start, w2s, stride=2), :])   # (w2s, C1)
            row_blocks.append(jnp.concatenate(taps, axis=1))              # (w2s, kh*kw*C1)
    p2 = jnp.concatenate(row_blocks, axis=0)                              # (M2, kh*kw*C1)

    # ---- conv2 matmul + ReLU
    h2 = jnp.dot(p2.astype(bf16), w2_ref[...], preferred_element_type=f32)
    h2 = jnp.maximum(h2 + b2_ref[...], 0.0)                               # (M2, C1)

    # ---- conv3 (1x1)
    z = jnp.dot(h2.astype(bf16), w3_ref[...], preferred_element_type=f32) + b3_ref[...]
    out_ref[...] = z.astype(out_ref.dtype)                                # (M2, z_dim)


def _fused_encoder(p1, w1, b1, w2, b2, w3, b3, *, batch, h1s, w1s, h2s, w2s):
    M1, K1 = p1.shape
    C1 = w1.shape[1]
    K2 = w2.shape[0]
    Z = w3.shape[1]
    M2 = batch * h2s * w2s

    kernel = functools.partial(_encoder_kernel, batch=batch, h1s=h1s, w1s=w1s,
                               h2s=h2s, w2s=w2s, kh=4, kw=4)

    flops = 2 * (M1 * K1 * C1 + M2 * K2 * C1 + M2 * C1 * Z)
    operands = (p1, w1, b1, w2, b2, w3, b3)
    bytes_accessed = sum(int(a.size) * a.dtype.itemsize for a in operands) + M2 * Z * 4

    return pl.pallas_call(
        kernel,
        out_shape=jax.ShapeDtypeStruct((M2, Z), jnp.float32),
        in_specs=[
            pl.BlockSpec((M1, K1), lambda: (0, 0)),
            pl.BlockSpec((K1, C1), lambda: (0, 0)),
            pl.BlockSpec((1, C1), lambda: (0, 0)),
            pl.BlockSpec((K2, C1), lambda: (0, 0)),
            pl.BlockSpec((1, C1), lambda: (0, 0)),
            pl.BlockSpec((C1, Z), lambda: (0, 0)),
            pl.BlockSpec((1, Z), lambda: (0, 0)),
        ],
        out_specs=pl.BlockSpec((M2, Z), lambda: (0, 0)),
        scratch_shapes=[pltpu.VMEM((batch * (h1s + 2) * (w1s + 2), C1), jnp.float32)],
        compiler_params=pltpu.CompilerParams(vmem_limit_bytes=32 * 1024 * 1024),
        cost_estimate=pl.CostEstimate(flops=flops, transcendentals=0,
                                      bytes_accessed=bytes_accessed),
    )(p1, w1, b1.reshape(1, C1), w2, b2.reshape(1, C1), w3, b3.reshape(1, Z))


# ----------------------------------------------------------------------------
# Wrapper-side glue: conv1 im2col on the raw input, weight layout conversion
# ----------------------------------------------------------------------------
def _im2col(x, kh, kw, stride, pad):
    """x: (N,H,W,C) -> patches (N*oh*ow, kh*kw*C), columns ordered (ki, kj, c)."""
    if pad:
        x = jnp.pad(x, ((0, 0), (pad, pad), (pad, pad), (0, 0)))
    n, h, w, c = x.shape
    oh = (h - kh) // stride + 1
    ow = (w - kw) // stride + 1
    cols = []
    for i in range(kh):
        for j in range(kw):
            cols.append(x[:, i:i + oh * stride:stride, j:j + ow * stride:stride, :])
    patches = jnp.concatenate(cols, axis=-1)             # (N, oh, ow, kh*kw*C)
    return patches.reshape(n * oh * ow, kh * kw * c), (n, oh, ow)


def _flatten_torch_conv_weight(wt):
    """PyTorch (Cout, Cin, kh, kw) -> ((ki, kj, ci), co), cast bf16 for the MXU."""
    co, ci, kh, kw = wt.shape
    return wt.transpose(2, 3, 1, 0).reshape(kh * kw * ci, co).astype(jnp.bfloat16)


def encoder_forward(params, x_nchw):
    """Matches Encoder.forward: NCHW in -> NCHW out of shape (N, z_dim, H/4, W/4)."""
    x = jnp.transpose(x_nchw, (0, 2, 3, 1))                                # NCHW -> NHWC
    n = x.shape[0]

    p1, (_, h1s, w1s) = _im2col(x, 4, 4, stride=2, pad=1)                  # (n*h1s*w1s, 48)
    h2s = (h1s + 2 - 4) // 2 + 1
    w2s = (w1s + 2 - 4) // 2 + 1

    z = _fused_encoder(
        p1,
        _flatten_torch_conv_weight(params["conv1_w"]), params["conv1_b"],
        _flatten_torch_conv_weight(params["conv2_w"]), params["conv2_b"],
        _flatten_torch_conv_weight(params["conv3_w"]), params["conv3_b"],
        batch=n, h1s=h1s, w1s=w1s, h2s=h2s, w2s=w2s)

    zdim = params["conv3_w"].shape[0]
    return z.reshape(n, h2s, w2s, zdim).transpose(0, 3, 1, 2)              # NHWC -> NCHW


# ----------------------------------------------------------------------------
# Pure-JAX f32 reference (for correctness check) and parameter init
# ----------------------------------------------------------------------------
def encoder_reference(params, x_nchw):
    dn = ("NCHW", "OIHW", "NCHW")
    prec = lax.Precision.HIGHEST
    h = lax.conv_general_dilated(x_nchw, params["conv1_w"], (2, 2), ((1, 1), (1, 1)),
                                 dimension_numbers=dn, precision=prec)
    h = jnp.maximum(h + params["conv1_b"][None, :, None, None], 0.0)
    h = lax.conv_general_dilated(h, params["conv2_w"], (2, 2), ((1, 1), (1, 1)),
                                 dimension_numbers=dn, precision=prec)
    h = jnp.maximum(h + params["conv2_b"][None, :, None, None], 0.0)
    z = lax.conv_general_dilated(h, params["conv3_w"], (1, 1), ((0, 0), (0, 0)),
                                 dimension_numbers=dn, precision=prec)
    return z + params["conv3_b"][None, :, None, None]


def init_params(key, in_channels=3, hidden_channels=128, z_dim=64):
    ks = jax.random.split(key, 6)

    def u(k, shape, fan_in):
        bound = 1.0 / (fan_in ** 0.5)
        return jax.random.uniform(k, shape, jnp.float32, -bound, bound)

    return {
        # PyTorch Conv2d layout: (Cout, Cin, kh, kw)
        "conv1_w": u(ks[0], (hidden_channels, in_channels, 4, 4), in_channels * 16),
        "conv1_b": u(ks[1], (hidden_channels,), in_channels * 16),
        "conv2_w": u(ks[2], (hidden_channels, hidden_channels, 4, 4), hidden_channels * 16),
        "conv2_b": u(ks[3], (hidden_channels,), hidden_channels * 16),
        "conv3_w": u(ks[4], (z_dim, hidden_channels, 1, 1), hidden_channels),
        "conv3_b": u(ks[5], (z_dim,), hidden_channels),
    }


if __name__ == "__main__":
    key = jax.random.PRNGKey(0)
    kp, kx = jax.random.split(key)

    params = init_params(kp, in_channels=3, hidden_channels=128, z_dim=64)
    x = jax.random.normal(kx, (2, 3, 16, 16), jnp.float32)      # NCHW like PyTorch

    z = jax.jit(encoder_forward)(params, x)
    jax.block_until_ready(z)

    assert z.shape == (2, 64, 4, 4)
    assert z.dtype == jnp.float32
    assert bool(jnp.all(jnp.isfinite(z)))

    # bf16 MXU operands with f32 accumulation => ~1e-3 drift vs. the f32 reference.
    z_ref = jax.jit(encoder_reference)(params, x)
    err = float(jnp.max(jnp.abs(z - z_ref)))
    assert err < 2e-2, f"max abs error vs reference too large: {err}"

    print("KERNEL_OK")
</pallas_src>

<mosaic_0001>
module attributes {stable_mosaic.version = 11 : i64} {
  func.func @_encoder_kernel(%arg0: memref<128x48xf32, #tpu.memory_space<vmem>>, %arg1: memref<48x128xbf16, #tpu.memory_space<vmem>>, %arg2: memref<1x128xf32, #tpu.memory_space<vmem>>, %arg3: memref<2048x128xbf16, #tpu.memory_space<vmem>>, %arg4: memref<1x128xf32, #tpu.memory_space<vmem>>, %arg5: memref<128x64xbf16, #tpu.memory_space<vmem>>, %arg6: memref<1x64xf32, #tpu.memory_space<vmem>>, %arg7: memref<32x64xf32, #tpu.memory_space<vmem>>, %arg8: memref<200x128xf32, #tpu.memory_space<vmem>>) attributes {dimension_semantics = [], scalar_prefetch = 0 : i64, scratch_operands = 1 : i64, tpu.core_type = #tpu.core_type<tc>} {
    %c0 = arith.constant 0 : index
    %c0_0 = arith.constant 0 : index
    %0 = vector.load %arg0[%c0, %c0_0] : memref<128x48xf32, #tpu.memory_space<vmem>>, vector<128x48xf32>
    %1 = arith.truncf %0 : vector<128x48xf32> to vector<128x48xbf16>
    %c0_1 = arith.constant 0 : index
    %c0_2 = arith.constant 0 : index
    %2 = vector.load %arg1[%c0_1, %c0_2] : memref<48x128xbf16, #tpu.memory_space<vmem>>, vector<48x128xbf16>
    %cst = arith.constant dense<0.000000e+00> : vector<128x128xf32>
    %3 = tpu.matmul %1, %2, %cst {dimension_numbers = #tpu.dot_dimension_numbers<[1], [0], [0], [1], [0, 0, 1, 1], [], []>} : vector<128x48xbf16>, vector<48x128xbf16>, vector<128x128xf32> -> vector<128x128xf32>
    %c0_3 = arith.constant 0 : index
    %c0_4 = arith.constant 0 : index
    %4 = vector.load %arg2[%c0_3, %c0_4] : memref<1x128xf32, #tpu.memory_space<vmem>>, vector<1x128xf32>
    %5 = vector.broadcast %4 : vector<1x128xf32> to vector<128x128xf32>
    %6 = arith.addf %3, %5 : vector<128x128xf32>
    %cst_5 = arith.constant 0.000000e+00 : f32
    %7 = vector.broadcast %cst_5 : f32 to vector<128x128xf32>
    %8 = arith.maximumf %6, %7 : vector<128x128xf32>
    %cst_6 = arith.constant 0.000000e+00 : f32
    %9 = vector.broadcast %cst_6 : f32 to vector<200x128xf32>
    %c0_7 = arith.constant 0 : index
    %c0_8 = arith.constant 0 : index
    %10 = vector.load %arg8[%c0_7, %c0_8] : memref<200x128xf32, #tpu.memory_space<vmem>>, vector<200x128xf32>
    tpu.vector_store %arg8[%c0_7, %c0_8], %9 {strides = array<i32>} : memref<200x128xf32, #tpu.memory_space<vmem>>, vector<200x128xf32>,
    %11 = vector.extract_strided_slice %8 {offsets = [0, 0], sizes = [8, 128], strides = [1, 1]} : vector<128x128xf32> to vector<8x128xf32>
    %c11 = arith.constant 11 : index
    %c0_9 = arith.constant 0 : index
    %12 = vector.load %arg8[%c11, %c0_9] : memref<200x128xf32, #tpu.memory_space<vmem>>, vector<8x128xf32>
    tpu.vector_store %arg8[%c11, %c0_9], %11 {strides = array<i32>} : memref<200x128xf32, #tpu.memory_space<vmem>>, vector<8x128xf32>,
    %13 = vector.extract_strided_slice %8 {offsets = [8, 0], sizes = [8, 128], strides = [1, 1]} : vector<128x128xf32> to vector<8x128xf32>
    %c21 = arith.constant 21 : index
    %c0_10 = arith.constant 0 : index
    %14 = vector.load %arg8[%c21, %c0_10] : memref<200x128xf32, #tpu.memory_space<vmem>>, vector<8x128xf32>
    tpu.vector_store %arg8[%c21, %c0_10], %13 {strides = array<i32>} : memref<200x128xf32, #tpu.memory_space<vmem>>, vector<8x128xf32>,
    %15 = vector.extract_strided_slice %8 {offsets = [16, 0], sizes = [8, 128], strides = [1, 1]} : vector<128x128xf32> to vector<8x128xf32>
    %c31 = arith.constant 31 : index
    %c0_11 = arith.constant 0 : index
    %16 = vector.load %arg8[%c31, %c0_11] : memref<200x128xf32, #tpu.memory_space<vmem>>, vector<8x128xf32>
    tpu.vector_store %arg8[%c31, %c0_11], %15 {strides = array<i32>} : memref<200x128xf32, #tpu.memory_space<vmem>>, vector<8x128xf32>,
    %17 = vector.extract_strided_slice %8 {offsets = [24, 0], sizes = [8, 128], strides = [1, 1]} : vector<128x128xf32> to vector<8x128xf32>
    %c41 = arith.constant 41 : index
    %c0_12 = arith.constant 0 : index
    %18 = vector.load %arg8[%c41, %c0_12] : memref<200x128xf32, #tpu.memory_space<vmem>>, vector<8x128xf32>
    tpu.vector_store %arg8[%c41, %c0_12], %17 {strides = array<i32>} : memref<200x128xf32, #tpu.memory_space<vmem>>, vector<8x128xf32>,
    %19 = vector.extract_strided_slice %8 {offsets = [32, 0], sizes = [8, 128], strides = [1, 1]} : vector<128x128xf32> to vector<8x128xf32>
    %c51 = arith.constant 51 : index
    %c0_13 = arith.constant 0 : index
    %20 = vector.load %arg8[%c51, %c0_13] : memref<200x128xf32, #tpu.memory_space<vmem>>, vector<8x128xf32>
    tpu.vector_store %arg8[%c51, %c0_13], %19 {strides = array<i32>} : memref<200x128xf32, #tpu.memory_space<vmem>>, vector<8x128xf32>,
    %21 = vector.extract_strided_slice %8 {offsets = [40, 0], sizes = [8, 128], strides = [1, 1]} : vector<128x128xf32> to vector<8x128xf32>
    %c61 = arith.constant 61 : index
    %c0_14 = arith.constant 0 : index
    %22 = vector.load %arg8[%c61, %c0_14] : memref<200x128xf32, #tpu.memory_space<vmem>>, vector<8x128xf32>
    tpu.vector_store %arg8[%c61, %c0_14], %21 {strides = array<i32>} : memref<200x128xf32, #tpu.memory_space<vmem>>, vector<8x128xf32>,
    %23 = vector.extract_strided_slice %8 {offsets = [48, 0], sizes = [8, 128], strides = [1, 1]} : vector<128x128xf32> to vector<8x128xf32>
    %c71 = arith.constant 71 : index
    %c0_15 = arith.constant 0 : index
    %24 = vector.load %arg8[%c71, %c0_15] : memref<200x128xf32, #tpu.memory_space<vmem>>, vector<8x128xf32>
    tpu.vector_store %arg8[%c71, %c0_15], %23 {strides = array<i32>} : memref<200x128xf32, #tpu.memory_space<vmem>>, vector<8x128xf32>,
    %25 = vector.extract_strided_slice %8 {offsets = [56, 0], sizes = [8, 128], strides = [1, 1]} : vector<128x128xf32> to vector<8x128xf32>
    %c81 = arith.constant 81 : index
    %c0_16 = arith.constant 0 : index
    %26 = vector.load %arg8[%c81, %c0_16] : memref<200x128xf32, #tpu.memory_space<vmem>>, vector<8x128xf32>
    tpu.vector_store %arg8[%c81, %c0_16], %25 {strides = array<i32>} : memref<200x128xf32, #tpu.memory_space<vmem>>, vector<8x128xf32>,
    %27 = vector.extract_strided_slice %8 {offsets = [64, 0], sizes = [8, 128], strides = [1, 1]} : vector<128x128xf32> to vector<8x128xf32>
    %c111 = arith.constant 111 : index
    %c0_17 = arith.constant 0 : index
    %28 = vector.load %arg8[%c111, %c0_17] : memref<200x128xf32, #tpu.memory_space<vmem>>, vector<8x128xf32>
    tpu.vector_store %arg8[%c111, %c0_17], %27 {strides = array<i32>} : memref<200x128xf32, #tpu.memory_space<vmem>>, vector<8x128xf32>,
    %29 = vector.extract_strided_slice %8 {offsets = [72, 0], sizes = [8, 128], strides = [1, 1]} : vector<128x128xf32> to vector<8x128xf32>
    %c121 = arith.constant 121 : index
    %c0_18 = arith.constant 0 : index
    %30 = vector.load %arg8[%c121, %c0_18] : memref<200x128xf32, #tpu.memory_space<vmem>>, vector<8x128xf32>
    tpu.vector_store %arg8[%c121, %c0_18], %29 {strides = array<i32>} : memref<200x128xf32, #tpu.memory_space<vmem>>, vector<8x128xf32>,
    %31 = vector.extract_strided_slice %8 {offsets = [80, 0], sizes = [8, 128], strides = [1, 1]} : vector<128x128xf32> to vector<8x128xf32>
    %c131 = arith.constant 131 : index
    %c0_19 = arith.constant 0 : index
    %32 = vector.load %arg8[%c131, %c0_19] : memref<200x128xf32, #tpu.memory_space<vmem>>, vector<8x128xf32>
    tpu.vector_store %arg8[%c131, %c0_19], %31 {strides = array<i32>} : memref<200x128xf32, #tpu.memory_space<vmem>>, vector<8x128xf32>,
    %33 = vector.extract_strided_slice %8 {offsets = [88, 0], sizes = [8, 128], strides = [1, 1]} : vector<128x128xf32> to vector<8x128xf32>
    %c141 = arith.constant 141 : index
    %c0_20 = arith.constant 0 : index
    %34 = vector.load %arg8[%c141, %c0_20] : memref<200x128xf32, #tpu.memory_space<vmem>>, vector<8x128xf32>
    tpu.vector_store %arg8[%c141, %c0_20], %33 {strides = array<i32>} : memref<200x128xf32, #tpu.memory_space<vmem>>, vector<8x128xf32>,
    %35 = vector.extract_strided_slice %8 {offsets = [96, 0], sizes = [8, 128], strides = [1, 1]} : vector<128x128xf32> to vector<8x128xf32>
    %c151 = arith.constant 151 : index
    %c0_21 = arith.constant 0 : index
    %36 = vector.load %arg8[%c151, %c0_21] : memref<200x128xf32, #tpu.memory_space<vmem>>, vector<8x128xf32>
    tpu.vector_store %arg8[%c151, %c0_21], %35 {strides = array<i32>} : memref<200x128xf32, #tpu.memory_space<vmem>>, vector<8x128xf32>,
    %37 = vector.extract_strided_slice %8 {offsets = [104, 0], sizes = [8, 128], strides = [1, 1]} : vector<128x128xf32> to vector<8x128xf32>
    %c161 = arith.constant 161 : index
    %c0_22 = arith.constant 0 : index
    %38 = vector.load %arg8[%c161, %c0_22] : memref<200x128xf32, #tpu.memory_space<vmem>>, vector<8x128xf32>
    tpu.vector_store %arg8[%c161, %c0_22], %37 {strides = array<i32>} : memref<200x128xf32, #tpu.memory_space<vmem>>, vector<8x128xf32>,
    %39 = vector.extract_strided_slice %8 {offsets = [112, 0], sizes = [8, 128], strides = [1, 1]} : vector<128x128xf32> to vector<8x128xf32>
    %c171 = arith.constant 171 : index
    %c0_23 = arith.constant 0 : index
    %40 = vector.load %arg8[%c171, %c0_23] : memref<200x128xf32, #tpu.memory_space<vmem>>, vector<8x128xf32>
    tpu.vector_store %arg8[%c171, %c0_23], %39 {strides = array<i32>} : memref<200x128xf32, #tpu.memory_space<vmem>>, vector<8x128xf32>,
    %41 = vector.extract_strided_slice %8 {offsets = [120, 0], sizes = [8, 128], strides = [1, 1]} : vector<128x128xf32> to vector<8x128xf32>
    %c181 = arith.constant 181 : index
    %c0_24 = arith.constant 0 : index
    %42 = vector.load %arg8[%c181, %c0_24] : memref<200x128xf32, #tpu.memory_space<vmem>>, vector<8x128xf32>
    tpu.vector_store %arg8[%c181, %c0_24], %41 {strides = array<i32>} : memref<200x128xf32, #tpu.memory_space<vmem>>, vector<8x128xf32>,
    %c0_25 = arith.constant 0 : index
    %c0_26 = arith.constant 0 : index
    %43 = tpu.strided_load %arg8[%c0_25, %c0_26] {strides = array<i32: 2, 1>} : memref<200x128xf32, #tpu.memory_space<vmem>>, vector<4x128xf32>
    %c1 = arith.constant 1 : index
    %c0_27 = arith.constant 0 : index
    %44 = tpu.strided_load %arg8[%c1, %c0_27] {strides = array<i32: 2, 1>} : memref<200x128xf32, #tpu.memory_space<vmem>>, vector<4x128xf32>
    %c2 = arith.constant 2 : index
    %c0_28 = arith.constant 0 : index
    %45 = tpu.strided_load %arg8[%c2, %c0_28] {strides = array<i32: 2, 1>} : memref<200x128xf32, #tpu.memory_space<vmem>>, vector<4x128xf32>
    %c3 = arith.constant 3 : index
    %c0_29 = arith.constant 0 : index
    %46 = tpu.strided_load %arg8[%c3, %c0_29] {strides = array<i32: 2, 1>} : memref<200x128xf32, #tpu.memory_space<vmem>>, vector<4x128xf32>
    %c10 = arith.constant 10 : index
    %c0_30 = arith.constant 0 : index
    %47 = tpu.strided_load %arg8[%c10, %c0_30] {strides = array<i32: 2, 1>} : memref<200x128xf32, #tpu.memory_space<vmem>>, vector<4x128xf32>
    %c11_31 = arith.constant 11 : index
    %c0_32 = arith.constant 0 : index
    %48 = tpu.strided_load %arg8[%c11_31, %c0_32] {strides = array<i32: 2, 1>} : memref<200x128xf32, #tpu.memory_space<vmem>>, vector<4x128xf32>
    %c12 = arith.constant 12 : index
    %c0_33 = arith.constant 0 : index
    %49 = tpu.strided_load %arg8[%c12, %c0_33] {strides = array<i32: 2, 1>} : memref<200x128xf32, #tpu.memory_space<vmem>>, vector<4x128xf32>
    %c13 = arith.constant 13 : index
    %c0_34 = arith.constant 0 : index
    %50 = tpu.strided_load %arg8[%c13, %c0_34] {strides = array<i32: 2, 1>} : memref<200x128xf32, #tpu.memory_space<vmem>>, vector<4x128xf32>
    %c20 = arith.constant 20 : index
    %c0_35 = arith.constant 0 : index
    %51 = tpu.strided_load %arg8[%c20, %c0_35] {strides = array<i32: 2, 1>} : memref<200x128xf32, #tpu.memory_space<vmem>>, vector<4x128xf32>
    %c21_36 = arith.constant 21 : index
    %c0_37 = arith.constant 0 : index
    %52 = tpu.strided_load %arg8[%c21_36, %c0_37] {strides = array<i32: 2, 1>} : memref<200x128xf32, #tpu.memory_space<vmem>>, vector<4x128xf32>
    %c22 = arith.constant 22 : index
    %c0_38 = arith.constant 0 : index
    %53 = tpu.strided_load %arg8[%c22, %c0_38] {strides = array<i32: 2, 1>} : memref<200x128xf32, #tpu.memory_space<vmem>>, vector<4x128xf32>
    %c23 = arith.constant 23 : index
    %c0_39 = arith.constant 0 : index
    %54 = tpu.strided_load %arg8[%c23, %c0_39] {strides = array<i32: 2, 1>} : memref<200x128xf32, #tpu.memory_space<vmem>>, vector<4x128xf32>
    %c30 = arith.constant 30 : index
    %c0_40 = arith.constant 0 : index
    %55 = tpu.strided_load %arg8[%c30, %c0_40] {strides = array<i32: 2, 1>} : memref<200x128xf32, #tpu.memory_space<vmem>>, vector<4x128xf32>
    %c31_41 = arith.constant 31 : index
    %c0_42 = arith.constant 0 : index
    %56 = tpu.strided_load %arg8[%c31_41, %c0_42] {strides = array<i32: 2, 1>} : memref<200x128xf32, #tpu.memory_space<vmem>>, vector<4x128xf32>
    %c32 = arith.constant 32 : index
    %c0_43 = arith.constant 0 : index
    %57 = tpu.strided_load %arg8[%c32, %c0_43] {strides = array<i32: 2, 1>} : memref<200x128xf32, #tpu.memory_space<vmem>>, vector<4x128xf32>
    %c33 = arith.constant 33 : index
    %c0_44 = arith.constant 0 : index
    %58 = tpu.strided_load %arg8[%c33, %c0_44] {strides = array<i32: 2, 1>} : memref<200x128xf32, #tpu.memory_space<vmem>>, vector<4x128xf32>
    %59 = tpu.concatenate %43, %44, %45, %46, %47, %48, %49, %50, %51, %52, %53, %54, %55, %56, %57, %58 in 1 : vector<4x128xf32>, vector<4x128xf32>, vector<4x128xf32>, vector<4x128xf32>, vector<4x128xf32>, vector<4x128xf32>, vector<4x128xf32>, vector<4x128xf32>, vector<4x128xf32>, vector<4x128xf32>, vector<4x128xf32>, vector<4x128xf32>, vector<4x128xf32>, vector<4x128xf32>, vector<4x128xf32>, vector<4x128xf32> -> vector<4x2048xf32>
    %c20_45 = arith.constant 20 : index
    %c0_46 = arith.constant 0 : index
    %60 = tpu.strided_load %arg8[%c20_45, %c0_46] {strides = array<i32: 2, 1>} : memref<200x128xf32, #tpu.memory_space<vmem>>, vector<4x128xf32>
    %c21_47 = arith.constant 21 : index
    %c0_48 = arith.constant 0 : index
    %61 = tpu.strided_load %arg8[%c21_47, %c0_48] {strides = array<i32: 2, 1>} : memref<200x128xf32, #tpu.memory_space<vmem>>, vector<4x128xf32>
    %c22_49 = arith.constant 22 : index
    %c0_50 = arith.constant 0 : index
    %62 = tpu.strided_load %arg8[%c22_49, %c0_50] {strides = array<i32: 2, 1>} : memref<200x128xf32, #tpu.memory_space<vmem>>, vector<4x128xf32>
    %c23_51 = arith.constant 23 : index
    %c0_52 = arith.constant 0 : index
    %63 = tpu.strided_load %arg8[%c23_51, %c0_52] {strides = array<i32: 2, 1>} : memref<200x128xf32, #tpu.memory_space<vmem>>, vector<4x128xf32>
    %c30_53 = arith.constant 30 : index
    %c0_54 = arith.constant 0 : index
    %64 = tpu.strided_load %arg8[%c30_53, %c0_54] {strides = array<i32: 2, 1>} : memref<200x128xf32, #tpu.memory_space<vmem>>, vector<4x128xf32>
    %c31_55 = arith.constant 31 : index
    %c0_56 = arith.constant 0 : index
    %65 = tpu.strided_load %arg8[%c31_55, %c0_56] {strides = array<i32: 2, 1>} : memref<200x128xf32, #tpu.memory_space<vmem>>, vector<4x128xf32>
    %c32_57 = arith.constant 32 : index
    %c0_58 = arith.constant 0 : index
    %66 = tpu.strided_load %arg8[%c32_57, %c0_58] {strides = array<i32: 2, 1>} : memref<200x128xf32, #tpu.memory_space<vmem>>, vector<4x128xf32>
    %c33_59 = arith.constant 33 : index
    %c0_60 = arith.constant 0 : index
    %67 = tpu.strided_load %arg8[%c33_59, %c0_60] {strides = array<i32: 2, 1>} : memref<200x128xf32, #tpu.memory_space<vmem>>, vector<4x128xf32>
    %c40 = arith.constant 40 : index
    %c0_61 = arith.constant 0 : index
    %68 = tpu.strided_load %arg8[%c40, %c0_61] {strides = array<i32: 2, 1>} : memref<200x128xf32, #tpu.memory_space<vmem>>, vector<4x128xf32>
    %c41_62 = arith.constant 41 : index
    %c0_63 = arith.constant 0 : index
    %69 = tpu.strided_load %arg8[%c41_62, %c0_63] {strides = array<i32: 2, 1>} : memref<200x128xf32, #tpu.memory_space<vmem>>, vector<4x128xf32>
    %c42 = arith.constant 42 : index
    %c0_64 = arith.constant 0 : index
    %70 = tpu.strided_load %arg8[%c42, %c0_64] {strides = array<i32: 2, 1>} : memref<200x128xf32, #tpu.memory_space<vmem>>, vector<4x128xf32>
    %c43 = arith.constant 43 : index
    %c0_65 = arith.constant 0 : index
    %71 = tpu.strided_load %arg8[%c43, %c0_65] {strides = array<i32: 2, 1>} : memref<200x128xf32, #tpu.memory_space<vmem>>, vector<4x128xf32>
    %c50 = arith.constant 50 : index
    %c0_66 = arith.constant 0 : index
    %72 = tpu.strided_load %arg8[%c50, %c0_66] {strides = array<i32: 2, 1>} : memref<200x128xf32, #tpu.memory_space<vmem>>, vector<4x128xf32>
    %c51_67 = arith.constant 51 : index
    %c0_68 = arith.constant 0 : index
    %73 = tpu.strided_load %arg8[%c51_67, %c0_68] {strides = array<i32: 2, 1>} : memref<200x128xf32, #tpu.memory_space<vmem>>, vector<4x128xf32>
    %c52 = arith.constant 52 : index
    %c0_69 = arith.constant 0 : index
    %74 = tpu.strided_load %arg8[%c52, %c0_69] {strides = array<i32: 2, 1>} : memref<200x128xf32, #tpu.memory_space<vmem>>, vector<4x128xf32>
    %c53 = arith.constant 53 : index
    %c0_70 = arith.constant 0 : index
    %75 = tpu.strided_load %arg8[%c53, %c0_70] {strides = array<i32: 2, 1>} : memref<200x128xf32, #tpu.memory_space<vmem>>, vector<4x128xf32>
    %76 = tpu.concatenate %60, %61, %62, %63, %64, %65, %66, %67, %68, %69, %70, %71, %72, %73, %74, %75 in 1 : vector<4x128xf32>, vector<4x128xf32>, vector<4x128xf32>, vector<4x128xf32>, vector<4x128xf32>, vector<4x128xf32>, vector<4x128xf32>, vector<4x128xf32>, vector<4x128xf32>, vector<4x128xf32>, vector<4x128xf32>, vector<4x128xf32>, vector<4x128xf32>, vector<4x128xf32>, vector<4x128xf32>, vector<4x128xf32> -> vector<4x2048xf32>
    %c40_71 = arith.constant 40 : index
    %c0_72 = arith.constant 0 : index
    %77 = tpu.strided_load %arg8[%c40_71, %c0_72] {strides = array<i32: 2, 1>} : memref<200x128xf32, #tpu.memory_space<vmem>>, vector<4x128xf32>
    %c41_73 = arith.constant 41 : index
    %c0_74 = arith.constant 0 : index
    %78 = tpu.strided_load %arg8[%c41_73, %c0_74] {strides = array<i32: 2, 1>} : memref<200x128xf32, #tpu.memory_space<vmem>>, vector<4x128xf32>
    %c42_75 = arith.constant 42 : index
    %c0_76 = arith.constant 0 : index
    %79 = tpu.strided_load %arg8[%c42_75, %c0_76] {strides = array<i32: 2, 1>} : memref<200x128xf32, #tpu.memory_space<vmem>>, vector<4x128xf32>
    %c43_77 = arith.constant 43 : index
    %c0_78 = arith.constant 0 : index
    %80 = tpu.strided_load %arg8[%c43_77, %c0_78] {strides = array<i32: 2, 1>} : memref<200x128xf32, #tpu.memory_space<vmem>>, vector<4x128xf32>
    %c50_79 = arith.constant 50 : index
    %c0_80 = arith.constant 0 : index
    %81 = tpu.strided_load %arg8[%c50_79, %c0_80] {strides = array<i32: 2, 1>} : memref<200x128xf32, #tpu.memory_space<vmem>>, vector<4x128xf32>
    %c51_81 = arith.constant 51 : index
    %c0_82 = arith.constant 0 : index
    %82 = tpu.strided_load %arg8[%c51_81, %c0_82] {strides = array<i32: 2, 1>} : memref<200x128xf32, #tpu.memory_space<vmem>>, vector<4x128xf32>
    %c52_83 = arith.constant 52 : index
    %c0_84 = arith.constant 0 : index
    %83 = tpu.strided_load %arg8[%c52_83, %c0_84] {strides = array<i32: 2, 1>} : memref<200x128xf32, #tpu.memory_space<vmem>>, vector<4x128xf32>
    %c53_85 = arith.constant 53 : index
    %c0_86 = arith.constant 0 : index
    %84 = tpu.strided_load %arg8[%c53_85, %c0_86] {strides = array<i32: 2, 1>} : memref<200x128xf32, #tpu.memory_space<vmem>>, vector<4x128xf32>
    %c60 = arith.constant 60 : index
    %c0_87 = arith.constant 0 : index
    %85 = tpu.strided_load %arg8[%c60, %c0_87] {strides = array<i32: 2, 1>} : memref<200x128xf32, #tpu.memory_space<vmem>>, vector<4x128xf32>
    %c61_88 = arith.constant 61 : index
    %c0_89 = arith.constant 0 : index
    %86 = tpu.strided_load %arg8[%c61_88, %c0_89] {strides = array<i32: 2, 1>} : memref<200x128xf32, #tpu.memory_space<vmem>>, vector<4x128xf32>
    %c62 = arith.constant 62 : index
    %c0_90 = arith.constant 0 : index
    %87 = tpu.strided_load %arg8[%c62, %c0_90] {strides = array<i32: 2, 1>} : memref<200x128xf32, #tpu.memory_space<vmem>>, vector<4x128xf32>
    %c63 = arith.constant 63 : index
    %c0_91 = arith.constant 0 : index
    %88 = tpu.strided_load %arg8[%c63, %c0_91] {strides = array<i32: 2, 1>} : memref<200x128xf32, #tpu.memory_space<vmem>>, vector<4x128xf32>
    %c70 = arith.constant 70 : index
    %c0_92 = arith.constant 0 : index
    %89 = tpu.strided_load %arg8[%c70, %c0_92] {strides = array<i32: 2, 1>} : memref<200x128xf32, #tpu.memory_space<vmem>>, vector<4x128xf32>
    %c71_93 = arith.constant 71 : index
    %c0_94 = arith.constant 0 : index
    %90 = tpu.strided_load %arg8[%c71_93, %c0_94] {strides = array<i32: 2, 1>} : memref<200x128xf32, #tpu.memory_space<vmem>>, vector<4x128xf32>
    %c72 = arith.constant 72 : index
    %c0_95 = arith.constant 0 : index
    %91 = tpu.strided_load %arg8[%c72, %c0_95] {strides = array<i32: 2, 1>} : memref<200x128xf32, #tpu.memory_space<vmem>>, vector<4x128xf32>
    %c73 = arith.constant 73 : index
    %c0_96 = arith.constant 0 : index
    %92 = tpu.strided_load %arg8[%c73, %c0_96] {strides = array<i32: 2, 1>} : memref<200x128xf32, #tpu.memory_space<vmem>>, vector<4x128xf32>
    %93 = tpu.concatenate %77, %78, %79, %80, %81, %82, %83, %84, %85, %86, %87, %88, %89, %90, %91, %92 in 1 : vector<4x128xf32>, vector<4x128xf32>, vector<4x128xf32>, vector<4x128xf32>, vector<4x128xf32>, vector<4x128xf32>, vector<4x128xf32>, vector<4x128xf32>, vector<4x128xf32>, vector<4x128xf32>, vector<4x128xf32>, vector<4x128xf32>, vector<4x128xf32>, vector<4x128xf32>, vector<4x128xf32>, vector<4x128xf32> -> vector<4x2048xf32>
    %c60_97 = arith.constant 60 : index
    %c0_98 = arith.constant 0 : index
    %94 = tpu.strided_load %arg8[%c60_97, %c0_98] {strides = array<i32: 2, 1>} : memref<200x128xf32, #tpu.memory_space<vmem>>, vector<4x128xf32>
    %c61_99 = arith.constant 61 : index
    %c0_100 = arith.constant 0 : index
    %95 = tpu.strided_load %arg8[%c61_99, %c0_100] {strides = array<i32: 2, 1>} : memref<200x128xf32, #tpu.memory_space<vmem>>, vector<4x128xf32>
    %c62_101 = arith.constant 62 : index
    %c0_102 = arith.constant 0 : index
    %96 = tpu.strided_load %arg8[%c62_101, %c0_102] {strides = array<i32: 2, 1>} : memref<200x128xf32, #tpu.memory_space<vmem>>, vector<4x128xf32>
    %c63_103 = arith.constant 63 : index
    %c0_104 = arith.constant 0 : index
    %97 = tpu.strided_load %arg8[%c63_103, %c0_104] {strides = array<i32: 2, 1>} : memref<200x128xf32, #tpu.memory_space<vmem>>, vector<4x128xf32>
    %c70_105 = arith.constant 70 : index
    %c0_106 = arith.constant 0 : index
    %98 = tpu.strided_load %arg8[%c70_105, %c0_106] {strides = array<i32: 2, 1>} : memref<200x128xf32, #tpu.memory_space<vmem>>, vector<4x128xf32>
    %c71_107 = arith.constant 71 : index
    %c0_108 = arith.constant 0 : index
    %99 = tpu.strided_load %arg8[%c71_107, %c0_108] {strides = array<i32: 2, 1>} : memref<200x128xf32, #tpu.memory_space<vmem>>, vector<4x128xf32>
    %c72_109 = arith.constant 72 : index
    %c0_110 = arith.constant 0 : index
    %100 = tpu.strided_load %arg8[%c72_109, %c0_110] {strides = array<i32: 2, 1>} : memref<200x128xf32, #tpu.memory_space<vmem>>, vector<4x128xf32>
    %c73_111 = arith.constant 73 : index
    %c0_112 = arith.constant 0 : index
    %101 = tpu.strided_load %arg8[%c73_111, %c0_112] {strides = array<i32: 2, 1>} : memref<200x128xf32, #tpu.memory_space<vmem>>, vector<4x128xf32>
    %c80 = arith.constant 80 : index
    %c0_113 = arith.constant 0 : index
    %102 = tpu.strided_load %arg8[%c80, %c0_113] {strides = array<i32: 2, 1>} : memref<200x128xf32, #tpu.memory_space<vmem>>, vector<4x128xf32>
    %c81_114 = arith.constant 81 : index
    %c0_115 = arith.constant 0 : index
    %103 = tpu.strided_load %arg8[%c81_114, %c0_115] {strides = array<i32: 2, 1>} : memref<200x128xf32, #tpu.memory_space<vmem>>, vector<4x128xf32>
    %c82 = arith.constant 82 : index
    %c0_116 = arith.constant 0 : index
    %104 = tpu.strided_load %arg8[%c82, %c0_116] {strides = array<i32: 2, 1>} : memref<200x128xf32, #tpu.memory_space<vmem>>, vector<4x128xf32>
    %c83 = arith.constant 83 : index
    %c0_117 = arith.constant 0 : index
    %105 = tpu.strided_load %arg8[%c83, %c0_117] {strides = array<i32: 2, 1>} : memref<200x128xf32, #tpu.memory_space<vmem>>, vector<4x128xf32>
    %c90 = arith.constant 90 : index
    %c0_118 = arith.constant 0 : index
    %106 = tpu.strided_load %arg8[%c90, %c0_118] {strides = array<i32: 2, 1>} : memref<200x128xf32, #tpu.memory_space<vmem>>, vector<4x128xf32>
    %c91 = arith.constant 91 : index
    %c0_119 = arith.constant 0 : index
    %107 = tpu.strided_load %arg8[%c91, %c0_119] {strides = array<i32: 2, 1>} : memref<200x128xf32, #tpu.memory_space<vmem>>, vector<4x128xf32>
    %c92 = arith.constant 92 : index
    %c0_120 = arith.constant 0 : index
    %108 = tpu.strided_load %arg8[%c92, %c0_120] {strides = array<i32: 2, 1>} : memref<200x128xf32, #tpu.memory_space<vmem>>, vector<4x128xf32>
    %c93 = arith.constant 93 : index
    %c0_121 = arith.constant 0 : index
    %109 = tpu.strided_load %arg8[%c93, %c0_121] {strides = array<i32: 2, 1>} : memref<200x128xf32, #tpu.memory_space<vmem>>, vector<4x128xf32>
    %110 = tpu.concatenate %94, %95, %96, %97, %98, %99, %100, %101, %102, %103, %104, %105, %106, %107, %108, %109 in 1 : vector<4x128xf32>, vector<4x128xf32>, vector<4x128xf32>, vector<4x128xf32>, vector<4x128xf32>, vector<4x128xf32>, vector<4x128xf32>, vector<4x128xf32>, vector<4x128xf32>, vector<4x128xf32>, vector<4x128xf32>, vector<4x128xf32>, vector<4x128xf32>, vector<4x128xf32>, vector<4x128xf32>, vector<4x128xf32> -> vector<4x2048xf32>
    %c100 = arith.constant 100 : index
    %c0_122 = arith.constant 0 : index
    %111 = tpu.strided_load %arg8[%c100, %c0_122] {strides = array<i32: 2, 1>} : memref<200x128xf32, #tpu.memory_space<vmem>>, vector<4x128xf32>
    %c101 = arith.constant 101 : index
    %c0_123 = arith.constant 0 : index
    %112 = tpu.strided_load %arg8[%c101, %c0_123] {strides = array<i32: 2, 1>} : memref<200x128xf32, #tpu.memory_space<vmem>>, vector<4x128xf32>
    %c102 = arith.constant 102 : index
    %c0_124 = arith.constant 0 : index
    %113 = tpu.strided_load %arg8[%c102, %c0_124] {strides = array<i32: 2, 1>} : memref<200x128xf32, #tpu.memory_space<vmem>>, vector<4x128xf32>
    %c103 = arith.constant 103 : index
    %c0_125 = arith.constant 0 : index
    %114 = tpu.strided_load %arg8[%c103, %c0_125] {strides = array<i32: 2, 1>} : memref<200x128xf32, #tpu.memory_space<vmem>>, vector<4x128xf32>
    %c110 = arith.constant 110 : index
    %c0_126 = arith.constant 0 : index
    %115 = tpu.strided_load %arg8[%c110, %c0_126] {strides = array<i32: 2, 1>} : memref<200x128xf32, #tpu.memory_space<vmem>>, vector<4x128xf32>
    %c111_127 = arith.constant 111 : index
    %c0_128 = arith.constant 0 : index
    %116 = tpu.strided_load %arg8[%c111_127, %c0_128] {strides = array<i32: 2, 1>} : memref<200x128xf32, #tpu.memory_space<vmem>>, vector<4x128xf32>
    %c112 = arith.constant 112 : index
    %c0_129 = arith.constant 0 : index
    %117 = tpu.strided_load %arg8[%c112, %c0_129] {strides = array<i32: 2, 1>} : memref<200x128xf32, #tpu.memory_space<vmem>>, vector<4x128xf32>
    %c113 = arith.constant 113 : index
    %c0_130 = arith.constant 0 : index
    %118 = tpu.strided_load %arg8[%c113, %c0_130] {strides = array<i32: 2, 1>} : memref<200x128xf32, #tpu.memory_space<vmem>>, vector<4x128xf32>
    %c120 = arith.constant 120 : index
    %c0_131 = arith.constant 0 : index
    %119 = tpu.strided_load %arg8[%c120, %c0_131] {strides = array<i32: 2, 1>} : memref<200x128xf32, #tpu.memory_space<vmem>>, vector<4x128xf32>
    %c121_132 = arith.constant 121 : index
    %c0_133 = arith.constant 0 : index
    %120 = tpu.strided_load %arg8[%c121_132, %c0_133] {strides = array<i32: 2, 1>} : memref<200x128xf32, #tpu.memory_space<vmem>>, vector<4x128xf32>
    %c122 = arith.constant 122 : index
    %c0_134 = arith.constant 0 : index
    %121 = tpu.strided_load %arg8[%c122, %c0_134] {strides = array<i32: 2, 1>} : memref<200x128xf32, #tpu.memory_space<vmem>>, vector<4x128xf32>
    %c123 = arith.constant 123 : index
    %c0_135 = arith.constant 0 : index
    %122 = tpu.strided_load %arg8[%c123, %c0_135] {strides = array<i32: 2, 1>} : memref<200x128xf32, #tpu.memory_space<vmem>>, vector<4x128xf32>
    %c130 = arith.constant 130 : index
    %c0_136 = arith.constant 0 : index
    %123 = tpu.strided_load %arg8[%c130, %c0_136] {strides = array<i32: 2, 1>} : memref<200x128xf32, #tpu.memory_space<vmem>>, vector<4x128xf32>
    %c131_137 = arith.constant 131 : index
    %c0_138 = arith.constant 0 : index
    %124 = tpu.strided_load %arg8[%c131_137, %c0_138] {strides = array<i32: 2, 1>} : memref<200x128xf32, #tpu.memory_space<vmem>>, vector<4x128xf32>
    %c132 = arith.constant 132 : index
    %c0_139 = arith.constant 0 : index
    %125 = tpu.strided_load %arg8[%c132, %c0_139] {strides = array<i32: 2, 1>} : memref<200x128xf32, #tpu.memory_space<vmem>>, vector<4x128xf32>
    %c133 = arith.constant 133 : index
    %c0_140 = arith.constant 0 : index
    %126 = tpu.strided_load %arg8[%c133, %c0_140] {strides = array<i32: 2, 1>} : memref<200x128xf32, #tpu.memory_space<vmem>>, vector<4x128xf32>
    %127 = tpu.concatenate %111, %112, %113, %114, %115, %116, %117, %118, %119, %120, %121, %122, %123, %124, %125, %126 in 1 : vector<4x128xf32>, vector<4x128xf32>, vector<4x128xf32>, vector<4x128xf32>, vector<4x128xf32>, vector<4x128xf32>, vector<4x128xf32>, vector<4x128xf32>, vector<4x128xf32>, vector<4x128xf32>, vector<4x128xf32>, vector<4x128xf32>, vector<4x128xf32>, vector<4x128xf32>, vector<4x128xf32>, vector<4x128xf32> -> vector<4x2048xf32>
    %c120_141 = arith.constant 120 : index
    %c0_142 = arith.constant 0 : index
    %128 = tpu.strided_load %arg8[%c120_141, %c0_142] {strides = array<i32: 2, 1>} : memref<200x128xf32, #tpu.memory_space<vmem>>, vector<4x128xf32>
    %c121_143 = arith.constant 121 : index
    %c0_144 = arith.constant 0 : index
    %129 = tpu.strided_load %arg8[%c121_143, %c0_144] {strides = array<i32: 2, 1>} : memref<200x128xf32, #tpu.memory_space<vmem>>, vector<4x128xf32>
    %c122_145 = arith.constant 122 : index
    %c0_146 = arith.constant 0 : index
    %130 = tpu.strided_load %arg8[%c122_145, %c0_146] {strides = array<i32: 2, 1>} : memref<200x128xf32, #tpu.memory_space<vmem>>, vector<4x128xf32>
    %c123_147 = arith.constant 123 : index
    %c0_148 = arith.constant 0 : index
    %131 = tpu.strided_load %arg8[%c123_147, %c0_148] {strides = array<i32: 2, 1>} : memref<200x128xf32, #tpu.memory_space<vmem>>, vector<4x128xf32>
    %c130_149 = arith.constant 130 : index
    %c0_150 = arith.constant 0 : index
    %132 = tpu.strided_load %arg8[%c130_149, %c0_150] {strides = array<i32: 2, 1>} : memref<200x128xf32, #tpu.memory_space<vmem>>, vector<4x128xf32>
    %c131_151 = arith.constant 131 : index
    %c0_152 = arith.constant 0 : index
    %133 = tpu.strided_load %arg8[%c131_151, %c0_152] {strides = array<i32: 2, 1>} : memref<200x128xf32, #tpu.memory_space<vmem>>, vector<4x128xf32>
    %c132_153 = arith.constant 132 : index
    %c0_154 = arith.constant 0 : index
    %134 = tpu.strided_load %arg8[%c132_153, %c0_154] {strides = array<i32: 2, 1>} : memref<200x128xf32, #tpu.memory_space<vmem>>, vector<4x128xf32>
    %c133_155 = arith.constant 133 : index
    %c0_156 = arith.constant 0 : index
    %135 = tpu.strided_load %arg8[%c133_155, %c0_156] {strides = array<i32: 2, 1>} : memref<200x128xf32, #tpu.memory_space<vmem>>, vector<4x128xf32>
    %c140 = arith.constant 140 : index
    %c0_157 = arith.constant 0 : index
    %136 = tpu.strided_load %arg8[%c140, %c0_157] {strides = array<i32: 2, 1>} : memref<200x128xf32, #tpu.memory_space<vmem>>, vector<4x128xf32>
    %c141_158 = arith.constant 141 : index
    %c0_159 = arith.constant 0 : index
    %137 = tpu.strided_load %arg8[%c141_158, %c0_159] {strides = array<i32: 2, 1>} : memref<200x128xf32, #tpu.memory_space<vmem>>, vector<4x128xf32>
    %c142 = arith.constant 142 : index
    %c0_160 = arith.constant 0 : index
    %138 = tpu.strided_load %arg8[%c142, %c0_160] {strides = array<i32: 2, 1>} : memref<200x128xf32, #tpu.memory_space<vmem>>, vector<4x128xf32>
    %c143 = arith.constant 143 : index
    %c0_161 = arith.constant 0 : index
    %139 = tpu.strided_load %arg8[%c143, %c0_161] {strides = array<i32: 2, 1>} : memref<200x128xf32, #tpu.memory_space<vmem>>, vector<4x128xf32>
    %c150 = arith.constant 150 : index
    %c0_162 = arith.constant 0 : index
    %140 = tpu.strided_load %arg8[%c150, %c0_162] {strides = array<i32: 2, 1>} : memref<200x128xf32, #tpu.memory_space<vmem>>, vector<4x128xf32>
    %c151_163 = arith.constant 151 : index
    %c0_164 = arith.constant 0 : index
    %141 = tpu.strided_load %arg8[%c151_163, %c0_164] {strides = array<i32: 2, 1>} : memref<200x128xf32, #tpu.memory_space<vmem>>, vector<4x128xf32>
    %c152 = arith.constant 152 : index
    %c0_165 = arith.constant 0 : index
    %142 = tpu.strided_load %arg8[%c152, %c0_165] {strides = array<i32: 2, 1>} : memref<200x128xf32, #tpu.memory_space<vmem>>, vector<4x128xf32>
    %c153 = arith.constant 153 : index
    %c0_166 = arith.constant 0 : index
    %143 = tpu.strided_load %arg8[%c153, %c0_166] {strides = array<i32: 2, 1>} : memref<200x128xf32, #tpu.memory_space<vmem>>, vector<4x128xf32>
    %144 = tpu.concatenate %128, %129, %130, %131, %132, %133, %134, %135, %136, %137, %138, %139, %140, %141, %142, %143 in 1 : vector<4x128xf32>, vector<4x128xf32>, vector<4x128xf32>, vector<4x128xf32>, vector<4x128xf32>, vector<4x128xf32>, vector<4x128xf32>, vector<4x128xf32>, vector<4x128xf32>, vector<4x128xf32>, vector<4x128xf32>, vector<4x128xf32>, vector<4x128xf32>, vector<4x128xf32>, vector<4x128xf32>, vector<4x128xf32> -> vector<4x2048xf32>
    %c140_167 = arith.constant 140 : index
    %c0_168 = arith.constant 0 : index
    %145 = tpu.strided_load %arg8[%c140_167, %c0_168] {strides = array<i32: 2, 1>} : memref<200x128xf32, #tpu.memory_space<vmem>>, vector<4x128xf32>
    %c141_169 = arith.constant 141 : index
    %c0_170 = arith.constant 0 : index
    %146 = tpu.strided_load %arg8[%c141_169, %c0_170] {strides = array<i32: 2, 1>} : memref<200x128xf32, #tpu.memory_space<vmem>>, vector<4x128xf32>
    %c142_171 = arith.constant 142 : index
    %c0_172 = arith.constant 0 : index
    %147 = tpu.strided_load %arg8[%c142_171, %c0_172] {strides = array<i32: 2, 1>} : memref<200x128xf32, #tpu.memory_space<vmem>>, vector<4x128xf32>
    %c143_173 = arith.constant 143 : index
    %c0_174 = arith.constant 0 : index
    %148 = tpu.strided_load %arg8[%c143_173, %c0_174] {strides = array<i32: 2, 1>} : memref<200x128xf32, #tpu.memory_space<vmem>>, vector<4x128xf32>
    %c150_175 = arith.constant 150 : index
    %c0_176 = arith.constant 0 : index
    %149 = tpu.strided_load %arg8[%c150_175, %c0_176] {strides = array<i32: 2, 1>} : memref<200x128xf32, #tpu.memory_space<vmem>>, vector<4x128xf32>
    %c151_177 = arith.constant 151 : index
    %c0_178 = arith.constant 0 : index
    %150 = tpu.strided_load %arg8[%c151_177, %c0_178] {strides = array<i32: 2, 1>} : memref<200x128xf32, #tpu.memory_space<vmem>>, vector<4x128xf32>
    %c152_179 = arith.constant 152 : index
    %c0_180 = arith.constant 0 : index
    %151 = tpu.strided_load %arg8[%c152_179, %c0_180] {strides = array<i32: 2, 1>} : memref<200x128xf32, #tpu.memory_space<vmem>>, vector<4x128xf32>
    %c153_181 = arith.constant 153 : index
    %c0_182 = arith.constant 0 : index
    %152 = tpu.strided_load %arg8[%c153_181, %c0_182] {strides = array<i32: 2, 1>} : memref<200x128xf32, #tpu.memory_space<vmem>>, vector<4x128xf32>
    %c160 = arith.constant 160 : index
    %c0_183 = arith.constant 0 : index
    %153 = tpu.strided_load %arg8[%c160, %c0_183] {strides = array<i32: 2, 1>} : memref<200x128xf32, #tpu.memory_space<vmem>>, vector<4x128xf32>
    %c161_184 = arith.constant 161 : index
    %c0_185 = arith.constant 0 : index
    %154 = tpu.strided_load %arg8[%c161_184, %c0_185] {strides = array<i32: 2, 1>} : memref<200x128xf32, #tpu.memory_space<vmem>>, vector<4x128xf32>
    %c162 = arith.constant 162 : index
    %c0_186 = arith.constant 0 : index
    %155 = tpu.strided_load %arg8[%c162, %c0_186] {strides = array<i32: 2, 1>} : memref<200x128xf32, #tpu.memory_space<vmem>>, vector<4x128xf32>
    %c163 = arith.constant 163 : index
    %c0_187 = arith.constant 0 : index
    %156 = tpu.strided_load %arg8[%c163, %c0_187] {strides = array<i32: 2, 1>} : memref<200x128xf32, #tpu.memory_space<vmem>>, vector<4x128xf32>
    %c170 = arith.constant 170 : index
    %c0_188 = arith.constant 0 : index
    %157 = tpu.strided_load %arg8[%c170, %c0_188] {strides = array<i32: 2, 1>} : memref<200x128xf32, #tpu.memory_space<vmem>>, vector<4x128xf32>
    %c171_189 = arith.constant 171 : index
    %c0_190 = arith.constant 0 : index
    %158 = tpu.strided_load %arg8[%c171_189, %c0_190] {strides = array<i32: 2, 1>} : memref<200x128xf32, #tpu.memory_space<vmem>>, vector<4x128xf32>
    %c172 = arith.constant 172 : index
    %c0_191 = arith.constant 0 : index
    %159 = tpu.strided_load %arg8[%c172, %c0_191] {strides = array<i32: 2, 1>} : memref<200x128xf32, #tpu.memory_space<vmem>>, vector<4x128xf32>
    %c173 = arith.constant 173 : index
    %c0_192 = arith.constant 0 : index
    %160 = tpu.strided_load %arg8[%c173, %c0_192] {strides = array<i32: 2, 1>} : memref<200x128xf32, #tpu.memory_space<vmem>>, vector<4x128xf32>
    %161 = tpu.concatenate %145, %146, %147, %148, %149, %150, %151, %152, %153, %154, %155, %156, %157, %158, %159, %160 in 1 : vector<4x128xf32>, vector<4x128xf32>, vector<4x128xf32>, vector<4x128xf32>, vector<4x128xf32>, vector<4x128xf32>, vector<4x128xf32>, vector<4x128xf32>, vector<4x128xf32>, vector<4x128xf32>, vector<4x128xf32>, vector<4x128xf32>, vector<4x128xf32>, vector<4x128xf32>, vector<4x128xf32>, vector<4x128xf32> -> vector<4x2048xf32>
    %c160_193 = arith.constant 160 : index
    %c0_194 = arith.constant 0 : index
    %162 = tpu.strided_load %arg8[%c160_193, %c0_194] {strides = array<i32: 2, 1>} : memref<200x128xf32, #tpu.memory_space<vmem>>, vector<4x128xf32>
    %c161_195 = arith.constant 161 : index
    %c0_196 = arith.constant 0 : index
    %163 = tpu.strided_load %arg8[%c161_195, %c0_196] {strides = array<i32: 2, 1>} : memref<200x128xf32, #tpu.memory_space<vmem>>, vector<4x128xf32>
    %c162_197 = arith.constant 162 : index
    %c0_198 = arith.constant 0 : index
    %164 = tpu.strided_load %arg8[%c162_197, %c0_198] {strides = array<i32: 2, 1>} : memref<200x128xf32, #tpu.memory_space<vmem>>, vector<4x128xf32>
    %c163_199 = arith.constant 163 : index
    %c0_200 = arith.constant 0 : index
    %165 = tpu.strided_load %arg8[%c163_199, %c0_200] {strides = array<i32: 2, 1>} : memref<200x128xf32, #tpu.memory_space<vmem>>, vector<4x128xf32>
    %c170_201 = arith.constant 170 : index
    %c0_202 = arith.constant 0 : index
    %166 = tpu.strided_load %arg8[%c170_201, %c0_202] {strides = array<i32: 2, 1>} : memref<200x128xf32, #tpu.memory_space<vmem>>, vector<4x128xf32>
    %c171_203 = arith.constant 171 : index
    %c0_204 = arith.constant 0 : index
    %167 = tpu.strided_load %arg8[%c171_203, %c0_204] {strides = array<i32: 2, 1>} : memref<200x128xf32, #tpu.memory_space<vmem>>, vector<4x128xf32>
    %c172_205 = arith.constant 172 : index
    %c0_206 = arith.constant 0 : index
    %168 = tpu.strided_load %arg8[%c172_205, %c0_206] {strides = array<i32: 2, 1>} : memref<200x128xf32, #tpu.memory_space<vmem>>, vector<4x128xf32>
    %c173_207 = arith.constant 173 : index
    %c0_208 = arith.constant 0 : index
    %169 = tpu.strided_load %arg8[%c173_207, %c0_208] {strides = array<i32: 2, 1>} : memref<200x128xf32, #tpu.memory_space<vmem>>, vector<4x128xf32>
    %c180 = arith.constant 180 : index
    %c0_209 = arith.constant 0 : index
    %170 = tpu.strided_load %arg8[%c180, %c0_209] {strides = array<i32: 2, 1>} : memref<200x128xf32, #tpu.memory_space<vmem>>, vector<4x128xf32>
    %c181_210 = arith.constant 181 : index
    %c0_211 = arith.constant 0 : index
    %171 = tpu.strided_load %arg8[%c181_210, %c0_211] {strides = array<i32: 2, 1>} : memref<200x128xf32, #tpu.memory_space<vmem>>, vector<4x128xf32>
    %c182 = arith.constant 182 : index
    %c0_212 = arith.constant 0 : index
    %172 = tpu.strided_load %arg8[%c182, %c0_212] {strides = array<i32: 2, 1>} : memref<200x128xf32, #tpu.memory_space<vmem>>, vector<4x128xf32>
    %c183 = arith.constant 183 : index
    %c0_213 = arith.constant 0 : index
    %173 = tpu.strided_load %arg8[%c183, %c0_213] {strides = array<i32: 2, 1>} : memref<200x128xf32, #tpu.memory_space<vmem>>, vector<4x128xf32>
    %c190 = arith.constant 190 : index
    %c0_214 = arith.constant 0 : index
    %174 = tpu.strided_load %arg8[%c190, %c0_214] {strides = array<i32: 2, 1>} : memref<200x128xf32, #tpu.memory_space<vmem>>, vector<4x128xf32>
    %c191 = arith.constant 191 : index
    %c0_215 = arith.constant 0 : index
    %175 = tpu.strided_load %arg8[%c191, %c0_215] {strides = array<i32: 2, 1>} : memref<200x128xf32, #tpu.memory_space<vmem>>, vector<4x128xf32>
    %c192 = arith.constant 192 : index
    %c0_216 = arith.constant 0 : index
    %176 = tpu.strided_load %arg8[%c192, %c0_216] {strides = array<i32: 2, 1>} : memref<200x128xf32, #tpu.memory_space<vmem>>, vector<4x128xf32>
    %c193 = arith.constant 193 : index
    %c0_217 = arith.constant 0 : index
    %177 = tpu.strided_load %arg8[%c193, %c0_217] {strides = array<i32: 2, 1>} : memref<200x128xf32, #tpu.memory_space<vmem>>, vector<4x128xf32>
    %178 = tpu.concatenate %162, %163, %164, %165, %166, %167, %168, %169, %170, %171, %172, %173, %174, %175, %176, %177 in 1 : vector<4x128xf32>, vector<4x128xf32>, vector<4x128xf32>, vector<4x128xf32>, vector<4x128xf32>, vector<4x128xf32>, vector<4x128xf32>, vector<4x128xf32>, vector<4x128xf32>, vector<4x128xf32>, vector<4x128xf32>, vector<4x128xf32>, vector<4x128xf32>, vector<4x128xf32>, vector<4x128xf32>, vector<4x128xf32> -> vector<4x2048xf32>
    %179 = tpu.concatenate %59, %76, %93, %110, %127, %144, %161, %178 in 0 : vector<4x2048xf32>, vector<4x2048xf32>, vector<4x2048xf32>, vector<4x2048xf32>, vector<4x2048xf32>, vector<4x2048xf32>, vector<4x2048xf32>, vector<4x2048xf32> -> vector<32x2048xf32>
    %180 = arith.truncf %179 : vector<32x2048xf32> to vector<32x2048xbf16>
    %c0_218 = arith.constant 0 : index
    %c0_219 = arith.constant 0 : index
    %181 = vector.load %arg3[%c0_218, %c0_219] : memref<2048x128xbf16, #tpu.memory_space<vmem>>, vector<2048x128xbf16>
    %cst_220 = arith.constant dense<0.000000e+00> : vector<32x128xf32>
    %182 = tpu.matmul %180, %181, %cst_220 {dimension_numbers = #tpu.dot_dimension_numbers<[1], [0], [0], [1], [0, 0, 1, 1], [], []>} : vector<32x2048xbf16>, vector<2048x128xbf16>, vector<32x128xf32> -> vector<32x128xf32>
    %c0_221 = arith.constant 0 : index
    %c0_222 = arith.constant 0 : index
    %183 = vector.load %arg4[%c0_221, %c0_222] : memref<1x128xf32, #tpu.memory_space<vmem>>, vector<1x128xf32>
    %184 = vector.broadcast %183 : vector<1x128xf32> to vector<32x128xf32>
    %185 = arith.addf %182, %184 : vector<32x128xf32>
    %cst_223 = arith.constant 0.000000e+00 : f32
    %186 = vector.broadcast %cst_223 : f32 to vector<32x128xf32>
    %187 = arith.maximumf %185, %186 : vector<32x128xf32>
    %188 = arith.truncf %187 : vector<32x128xf32> to vector<32x128xbf16>
    %c0_224 = arith.constant 0 : index
    %c0_225 = arith.constant 0 : index
    %189 = vector.load %arg5[%c0_224, %c0_225] : memref<128x64xbf16, #tpu.memory_space<vmem>>, vector<128x64xbf16>
    %cst_226 = arith.constant dense<0.000000e+00> : vector<32x64xf32>
    %190 = tpu.matmul %188, %189, %cst_226 {dimension_numbers = #tpu.dot_dimension_numbers<[1], [0], [0], [1], [0, 0, 1, 1], [], []>} : vector<32x128xbf16>, vector<128x64xbf16>, vector<32x64xf32> -> vector<32x64xf32>
    %c0_227 = arith.constant 0 : index
    %c0_228 = arith.constant 0 : index
    %191 = vector.load %arg6[%c0_227, %c0_228] : memref<1x64xf32, #tpu.memory_space<vmem>>, vector<1x64xf32>
    %192 = vector.broadcast %191 : vector<1x64xf32> to vector<32x64xf32>
    %193 = arith.addf %190, %192 : vector<32x64xf32>
    %c0_229 = arith.constant 0 : index
    %c0_230 = arith.constant 0 : index
    %194 = vector.load %arg7[%c0_229, %c0_230] : memref<32x64xf32, #tpu.memory_space<vmem>>, vector<32x64xf32>
    tpu.vector_store %arg7[%c0_229, %c0_230], %193 {strides = array<i32>} : memref<32x64xf32, #tpu.memory_space<vmem>>, vector<32x64xf32>,
    return
  }
}

</mosaic_0001>

<bundles_post_ra>
// kernel: encoder_forward.1
= control target key start
LH: loop header
LB: loop body
LE: loop exit
PB: predicated region body
PF: predicated region fallthrough
CT: control target
= control target key end

     0   :  { %vm83_vm0 = vcmask 392192   ;;  %v2884_v37 = vmov 0.0   ;;  %s3715_s0 = inlined_call_operand.vmem [shape: f32[128,48], index: 0, kind: input, shape index: {}]   ;;  %s3716_s1 = inlined_call_operand.vmem [shape: bf16[48,128], index: 1, kind: input, shape index: {}]   ;;  %s3717_s2 = inlined_call_operand.vmem [shape: f32[1,128], index: 2, kind: input, shape index: {}]   ;;  %s3718_s3 = inlined_call_operand.vmem [shape: bf16[2048,128], index: 3, kind: input, shape index: {}]   ;;  %s3719_s4 = inlined_call_operand.vmem [shape: f32[1,128], index: 4, kind: input, shape index: {}]   ;;  %s3720_s5 = inlined_call_operand.vmem [shape: bf16[128,64], index: 5, kind: input, shape index: {}]   ;;  %s3721_s6 = inlined_call_operand.vmem [shape: f32[1,64], index: 6, kind: input, shape index: {}]   ;;  %s3722_s7 = inlined_call_operand.hbm [shape: f32[32,64], index: 7, kind: output, shape index: {}]  }
   0x1   :  { %v2721_v0 = vld [vmem:[%s3716_s1] sm:$0xff]   ;;  %v2722_v1 = vld [vmem:[%s3716_s1 + $0x8] sm:$0xff]   ;;  %v2723_v4 = vld [vmem:[%s3716_s1 + $0x10] sm:$0xff]   ;;  %224 = vst [vmem:[#allocation2 + $0x18] sm:$0xff] %v2884_v37 }
   0x2   :  { %2675 = vmatprep.subr.bf16.mxu0 %v2721_v0  ;;  %v28_v2 = vld [vmem:[%s3715_s0] sm:$0xff]  ;;  %v29_v3 = vld [vmem:[%s3715_s0 + $0x8] sm:$0xff]  ;;  %v30_v6 = vld [vmem:[%s3715_s0 + $0x10] sm:$0xff]  ;;  %225 = vst [vmem:[#allocation2 + $0x20] sm:$0xff] %v2884_v37 }
   0x3   :  { %2676 = vmatpush3.bf16.msra.mxu0 %v2721_v0  ;;  %v44_v5 = vpack.c.bf16 %v29_v3, %v28_v2  ;;  %v31_v7 = vld [vmem:[%s3715_s0 + $0x18] sm:$0xff]  ;;  %v32_v8 = vld [vmem:[%s3715_s0 + $0x20] sm:$0xff]  ;;  %v33_v9 = vld [vmem:[%s3715_s0 + $0x28] sm:$0xff]  ;;  %221 = vst [vmem:[#allocation2] sm:$0xff] %v2884_v37 }
   0x4   :  { %2677 = vmatprep.subr.bf16.mxu0 %v2722_v1  ;;  %v2724_v10 = vld [vmem:[%s3718_s3 + $0x40] sm:$0xff]   ;;  %v45_v11 = vpack.c.bf16 %v31_v7, %v30_v6  ;;  %v46_v13 = vpack.c.bf16 %v33_v9, %v32_v8  ;;  %v34_v16 = vld [vmem:[%s3715_s0 + $0x30] sm:$0xff]  ;;  %v35_v17 = vld [vmem:[%s3715_s0 + $0x38] sm:$0xff]  ;;  %222 = vst [vmem:[#allocation2 + $0x8] sm:$0xff] %v2884_v37 }
   0x5   :  { %2681 = vmatprep.mubr.msk.bf16.mxu0 %vm83_vm0, %v44_v5  ;;  %v2725_v12 = vld [vmem:[%s3718_s3 + $0xc0] sm:$0xff]   ;;  %2441 = vmatprep.subr.bf16.mxu1 %v2724_v10  ;;  %v37_v19 = vld [vmem:[%s3715_s0 + $0x48] sm:$0xff]  ;;  %v47_v20 = vpack.c.bf16 %v35_v17, %v34_v16  ;;  %v38_v22 = vld [vmem:[%s3715_s0 + $0x50] sm:$0xff]  ;;  %223 = vst [vmem:[#allocation2 + $0x10] sm:$0xff] %v2884_v37 }
   0x6   :  { %v2726_v14 = vld [vmem:[%s3718_s3] sm:$0xff]   ;;  %v39_v23 = vld [vmem:[%s3715_s0 + $0x58] sm:$0xff]  ;;  %v41_v25 = vld [vmem:[%s3715_s0 + $0x68] sm:$0xff]  ;;  %226 = vst [vmem:[#allocation2 + $0x28] sm:$0xff] %v2884_v37 }
   0x7   :  { %2678 = vmatpush3.bf16.msra.mxu0 %v2722_v1  ;;  %v2727_v15 = vld [vmem:[%s3718_s3 + $0x80] sm:$0xff]   ;;  %2442 = vmatpush3.bf16.msra.mxu1 %v2726_v14  ;;  %v49_v26 = vpack.c.bf16 %v39_v23, %v38_v22  ;;  %v42_v28 = vld [vmem:[%s3715_s0 + $0x70] sm:$0xff]  ;;  %v43_v29 = vld [vmem:[%s3715_s0 + $0x78] sm:$0xff]  ;;  %227 = vst [vmem:[#allocation2 + $0x30] sm:$0xff] %v2884_v37 }
   0x8   :  { %2679 = vmatprep.subr.bf16.mxu0 %v2723_v4  ;;  %v36_v18 = vld [vmem:[%s3715_s0 + $0x40] sm:$0xff]  ;;  %v51_v30 = vpack.c.bf16 %v43_v29, %v42_v28  ;;  %v2728_v31 = vld [vmem:[%s3718_s3 + $0x48] sm:$0xff]   ;;  %v2732_v35 = vld [vmem:[%s3718_s3 + $0x50] sm:$0xff]   ;;  %228 = vst [vmem:[#allocation2 + $0x38] sm:$0xff] %v2884_v37 }
   0x9   :  { %v48_v21 = vpack.c.bf16 %v37_v19, %v36_v18  ;;  %v40_v24 = vld [vmem:[%s3715_s0 + $0x60] sm:$0xff]  ;;  %v2729_v32 = vld [vmem:[%s3718_s3 + $0xc8] sm:$0xff]   ;;  %2443 = vmatprep.subr.bf16.mxu1 %v2728_v31  ;;  %v2733_v36 = vld [vmem:[%s3718_s3 + $0xd0] sm:$0xff]   ;;  %229 = vst [vmem:[#allocation2 + $0x40] sm:$0xff] %v2884_v37 }
   0xa   :  { %v50_v27 = vpack.c.bf16 %v41_v25, %v40_v24  ;;  %v2730_v33 = vld [vmem:[%s3718_s3 + $0x8] sm:$0xff]   ;;  %230 = vst [vmem:[#allocation2 + $0x48] sm:$0xff] %v2884_v37  ;;  %231 = vst [vmem:[#allocation2 + $0x50] sm:$0xff] %v2884_v37  ;;  %v2734_v38 = vld [vmem:[%s3718_s3 + $0x10] sm:$0xff]  }
   0xb   :  { %2680 = vmatpush3.bf16.msra.mxu0 %v2723_v4  ;;  %v2731_v34 = vld [vmem:[%s3718_s3 + $0x88] sm:$0xff]   ;;  %2444 = vmatpush3.bf16.msra.mxu1 %v2730_v33  ;;  %232 = vst [vmem:[#allocation2 + $0x58] sm:$0xff] %v2884_v37  ;;  %233 = vst [vmem:[#allocation2 + $0x60] sm:$0xff] %v2884_v37  ;;  %v2735_v39 = vld [vmem:[%s3718_s3 + $0x90] sm:$0xff]  }
   0xc   :  { %2469 = vmatprep.subr.bf16.mxu0 %v2725_v12  ;;  %234 = vst [vmem:[#allocation2 + $0x68] sm:$0xff] %v2884_v37  ;;  %235 = vst [vmem:[#allocation2 + $0x70] sm:$0xff] %v2884_v37  ;;  %2445 = vmatprep.subr.bf16.mxu1 %v2732_v35 }
   0xd   :  { %236 = vst [vmem:[#allocation2 + $0x78] sm:$0xff] %v2884_v37  ;;  %237 = vst [vmem:[#allocation2 + $0x80] sm:$0xff] %v2884_v37 }
   0xe   :  { %2682 = vmatmul.mubr.msk.bf16.vlgmr.msra.gmra.mrb[0].mxu0 %vm83_vm0, %v45_v11  ;;  %238 = vst [vmem:[#allocation2 + $0x88] sm:$0xff] %v2884_v37  ;;  %239 = vst [vmem:[#allocation2 + $0x90] sm:$0xff] %v2884_v37 }
   0xf   :  { %2685 = vmatprep.mubr.msk.bf16.mxu0 %vm83_vm0, %v46_v13  ;;  %2470 = vmatpush3.bf16.msra.mxu0 %v2727_v15  ;;  %240 = vst [vmem:[#allocation2 + $0x98] sm:$0xff] %v2884_v37  ;;  %241 = vst [vmem:[#allocation2 + $0xa0] sm:$0xff] %v2884_v37 }
  0x10   :  { %2471 = vmatprep.subr.bf16.mxu0 %v2729_v32  ;;  %242 = vst [vmem:[#allocation2 + $0xa8] sm:$0xff] %v2884_v37  ;;  %243 = vst [vmem:[#allocation2 + $0xb0] sm:$0xff] %v2884_v37  ;;  %2446 = vmatpush3.bf16.msra.mxu1 %v2734_v38 }
  0x11   :  { %244 = vst [vmem:[#allocation2 + $0xb8] sm:$0xff] %v2884_v37  ;;  %245 = vst [vmem:[#allocation2 + $0xc0] sm:$0xff] %v2884_v37 }
  0x13   :  { %2472 = vmatpush3.bf16.msra.mxu0 %v2731_v34 }
  0x14   :  { %2473 = vmatprep.subr.bf16.mxu0 %v2733_v36 }
  0x16   :  { %2686 = vmatmul.mubr.msk.bf16.gmra.mrb[4].mxu0 %vm83_vm0, %v47_v20 }
  0x17   :  { %2689 = vmatprep.mubr.msk.bf16.mxu0 %vm83_vm0, %v48_v21  ;;  %2474 = vmatpush3.bf16.msra.mxu0 %v2735_v39 }
  0x1e   :  { %2690 = vmatmul.mubr.msk.bf16.gmra.mrb[8].mxu0 %vm83_vm0, %v49_v26 }
  0x1f   :  { %2693 = vmatprep.mubr.msk.bf16.mxu0 %vm83_vm0, %v50_v27 }
  0x26   :  { %2694 = vmatmul.mubr.msk.bf16.gmra.mrb[12].mxu0 %vm83_vm0, %v51_v30 }
  0x27   :  { %12 = vsyncpa [#allocation4], 0  ;;  %v2736_v40 = vld [vmem:[%s3718_s3 + $0x58] sm:$0xff]   ;;  %v2740_v44 = vld [vmem:[%s3718_s3 + $0x60] sm:$0xff]   ;;  %vm613_vm1 = vcmask 1043456   ;;  %vm2259_vm2 = vcmask 523264  }
  0x28   :  { %v2737_v41 = vld [vmem:[%s3718_s3 + $0xd8] sm:$0xff]   ;;  %2447 = vmatprep.subr.bf16.mxu1 %v2736_v40  ;;  %v2741_v45 = vld [vmem:[%s3718_s3 + $0xe0] sm:$0xff]   ;;  %v2744_v48 = vld [vmem:[%s3718_s3 + $0x68] sm:$0xff]   ;;  %s2885_s30 = smov [#allocation3]  }
  0x29   :  { %v2738_v42 = vld [vmem:[%s3718_s3 + $0x18] sm:$0xff]   ;;  %2475 = vmatprep.subr.bf16.mxu0 %v2737_v41  ;;  %v2742_v46 = vld [vmem:[%s3718_s3 + $0x20] sm:$0xff]   ;;  %v2745_v49 = vld [vmem:[%s3718_s3 + $0xe8] sm:$0xff]   ;;  %s2269_s8 = sshll.u32 %s2885_s30, 4  ;;  %s2270_s8 = int_to_ptr.vmem [resolvable:$true] %s2269_s8 }
  0x2a   :  { %v2739_v43 = vld [vmem:[%s3718_s3 + $0x98] sm:$0xff]   ;;  %2448 = vmatpush3.bf16.msra.mxu1 %v2738_v42  ;;  %v2743_v47 = vld [vmem:[%s3718_s3 + $0xa0] sm:$0xff]   ;;  %v2746_v50 = vld [vmem:[%s3718_s3 + $0x28] sm:$0xff]   ;;  %s2860_s9 = scalar_lea.vmem %s2270_s8, 512  ;;  %p2865_p1 = scmp.lt.s32.totalorder %s2270_s8, %s2270_s8 }
  0x2b   :  { %2476 = vmatpush3.bf16.msra.mxu0 %v2739_v43  ;;  %2449 = vmatprep.subr.bf16.mxu1 %v2740_v44  ;;  %v2747_v51 = vld [vmem:[%s3718_s3 + $0xa8] sm:$0xff]   ;;  %v2748_v52 = vld [vmem:[%s3718_s3 + $0x70] sm:$0xff]   ;;  %v2752_v56 = vld [vmem:[%s3718_s3 + $0x78] sm:$0xff]   ;;  %p2861_p0 = scmp.ne.s32.totalorder %s2270_s8, %s2860_s9  ;;  %p2866_p2 = scmp.lt.s32.totalorder %s2860_s9, %s2860_s9 }
  0x2c   :  { %2477 = vmatprep.subr.bf16.mxu0 %v2741_v45  ;;  %v2749_v53 = vld [vmem:[%s3718_s3 + $0xf0] sm:$0xff]   ;;  %v2753_v57 = vld [vmem:[%s3718_s3 + $0xf8] sm:$0xff]   ;;  %v2756_v60 = vld [vmem:[%s3718_s3 + $0x140] sm:$0xff]  }
  0x2d   :  { %v2750_v54 = vld [vmem:[%s3718_s3 + $0x30] sm:$0xff]   ;;  %v2754_v58 = vld [vmem:[%s3718_s3 + $0x38] sm:$0xff]   ;;  %v2757_v61 = vld [vmem:[%s3718_s3 + $0x1c0] sm:$0xff]   ;;  %p2867_p3 = por %p2866_p2, %p2865_p1 }
  0x2e   :  { %2450 = vmatpush3.bf16.msra.mxu1 %v2742_v46  ;;  %v2751_v55 = vld [vmem:[%s3718_s3 + $0xb0] sm:$0xff]   ;;  %v2755_v59 = vld [vmem:[%s3718_s3 + $0xb8] sm:$0xff]   ;;  %v3098_v62 = vld [vmem:[%s3717_s2] ss:$0 sm:$0xff] }
  0x2f   :  { %2478 = vmatpush3.bf16.msra.mxu0 %v2743_v47  ;;  %2451 = vmatprep.subr.bf16.mxu1 %v2744_v48  ;;  %v264_v30 = vld [vmem:[#allocation2 + $0x1] ss:$2 sm:$0xf]  ;;  %v262_v41 = vld [vmem:[#allocation2] ss:$2 sm:$0xf]  ;;  %p2868_p4 = pnand %p2867_p3, %p2861_p0 }
  0x30   :  { %2479 = vmatprep.subr.bf16.mxu0 %v2745_v49  ;;  %v268_v36 = vld [vmem:[#allocation2 + $0x3] ss:$2 sm:$0xf] }
  0x32   :  { %2452 = vmatpush3.bf16.msra.mxu1 %v2746_v50 }
  0x33   :  { %2480 = vmatpush3.bf16.msra.mxu0 %v2747_v51  ;;  %2453 = vmatprep.subr.bf16.mxu1 %v2748_v52 }
  0x34   :  { %2481 = vmatprep.subr.bf16.mxu0 %v2749_v53 }
  0x36   :  { %2454 = vmatpush3.bf16.msra.mxu1 %v2750_v54 }
  0x37   :  { %2482 = vmatpush3.bf16.msra.mxu0 %v2751_v55  ;;  %2455 = vmatprep.subr.bf16.mxu1 %v2752_v56 }
  0x38   :  { %2483 = vmatprep.subr.bf16.mxu0 %v2753_v57 }
  0x3a   :  { %2456 = vmatpush3.bf16.msra.mxu1 %v2754_v58 }
  0x3b   :  { %2484 = vmatpush3.bf16.msra.mxu0 %v2755_v59  ;;  %2497 = vmatprep.subr.bf16.mxu1 %v2756_v60 }
  0x3c   :  { %2525 = vmatprep.subr.bf16.mxu0 %v2757_v61 }
  0xe1   :  { %v2683_v63 = vpop.f32.mrb[0].mxu0 }
  0xe2   :  { %v151_v0 = vadd.f32 %v2683_v63, %v3098_v62  ;;  %v142_v1 = vpop.f32.mrb[1].mxu0 }
  0xe3   :  { %v143_v2 = vadd.f32 %v3098_v62, %v142_v1  ;;  %v2684_v3 = vpop.f32.mrb[2].mxu0 }
  0xe4   :  { %v207_v4 = vmax.f32 %v151_v0, 0.0  ;;  %v154_v5 = vadd.f32 %v2684_v3, %v3098_v62  ;;  %v145_v6 = vpop.f32.mrb[3].mxu0 }
  0xe5   :  { %v205_v7 = vmax.f32 %v143_v2, 0.0  ;;  %v146_v8 = vadd.f32 %v3098_v62, %v145_v6 }
  0xe6   :  { %248 = vst [vmem:[#allocation2 + $0x1f] sm:$0xff] %v207_v4  ;;  %v208_v9 = vmax.f32 %v154_v5, 0.0 }
  0xe7   :  { %246 = vst [vmem:[#allocation2 + $0xb] sm:$0xff] %v205_v7  ;;  %v206_v10 = vmax.f32 %v146_v8, 0.0 }
  0xe8   :  { %249 = vst [vmem:[#allocation2 + $0x29] sm:$0xff] %v208_v9 }
  0xe9   :  { %247 = vst [vmem:[#allocation2 + $0x15] sm:$0xff] %v206_v10  ;;  %v2687_v11 = vpop.f32.mrb[4].mxu0  ;;  %v266_v10 = vld [vmem:[#allocation2 + $0x2] ss:$2 sm:$0xf] }
  0xea   :  { %v167_v12 = vadd.f32 %v2687_v11, %v3098_v62  ;;  %v158_v13 = vpop.f32.mrb[5].mxu0 }
  0xeb   :  { %v159_v14 = vadd.f32 %v3098_v62, %v158_v13  ;;  %v2688_v15 = vpop.f32.mrb[6].mxu0 }
  0xec   :  { %v211_v16 = vmax.f32 %v167_v12, 0.0  ;;  %v170_v17 = vadd.f32 %v2688_v15, %v3098_v62  ;;  %v161_v18 = vpop.f32.mrb[7].mxu0 }
  0xed   :  { %v209_v19 = vmax.f32 %v159_v14, 0.0  ;;  %v162_v20 = vadd.f32 %v3098_v62, %v161_v18 }
  0xee   :  { %252 = vst [vmem:[#allocation2 + $0x47] sm:$0xff] %v211_v16  ;;  %v212_v21 = vmax.f32 %v170_v17, 0.0 }
  0xef   :  { %250 = vst [vmem:[#allocation2 + $0x33] sm:$0xff] %v209_v19  ;;  %v210_v22 = vmax.f32 %v162_v20, 0.0  ;;  %v294_v37 = vld [vmem:[#allocation2 + $0x28] ss:$2 sm:$0xf] }
  0xf0   :  { %253 = vst [vmem:[#allocation2 + $0x51] sm:$0xff] %v212_v21  ;;  %v3108_v24 = vld [vmem:[#allocation2 + $0x15] ss:$2 sm:$0xf]  ;;  %v445_v42 = vrot.slane %v294_v37, 4  ;;  %v2758_v21 = vld [vmem:[%s3718_s3 + $0x100] sm:$0xff]  }
  0xf1   :  { %251 = vst [vmem:[#allocation2 + $0x3d] sm:$0xff] %v210_v22  ;;  %v2691_v23 = vpop.f32.mrb[8].mxu0  ;;  %v3111_v27 = vld [vmem:[#allocation2 + $0x17] ss:$2 sm:$0xf]  ;;  %v438_v35 = vrot.slane %v3108_v24, 4 }
  0xf2   :  { %v183_v25 = vadd.f32 %v2691_v23, %v3098_v62  ;;  %v174_v26 = vpop.f32.mrb[9].mxu0  ;;  %v278_v31 = vld [vmem:[#allocation2 + $0x14] ss:$2 sm:$0xf]  ;;  %v440_v40 = vrot.slane %v3111_v27, 4 }
  0xf3   :  { %v175_v28 = vadd.f32 %v3098_v62, %v174_v26  ;;  %v2692_v29 = vpop.f32.mrb[10].mxu0  ;;  %v282_v43 = vld [vmem:[#allocation2 + $0x16] ss:$2 sm:$0xf]  ;;  %v437_v45 = vrot.slane %v278_v31, 4  ;;  %v3119_v49 = vsel %vm613_vm1, %v278_v31, %v445_v42  ;;  %v615_v54 = vsel %vm613_vm1, %v264_v30, %v438_v35  ;;  %v2761_v31 = vld [vmem:[%s3718_s3 + $0x1c8] sm:$0xff]  }
  0xf4   :  { %v215_v32 = vmax.f32 %v183_v25, 0.0  ;;  %v186_v33 = vadd.f32 %v2692_v29, %v3098_v62  ;;  %v177_v34 = vpop.f32.mrb[11].mxu0  ;;  %v298_v46 = vld [vmem:[#allocation2 + $0x2a] ss:$2 sm:$0xf]  ;;  %v439_v50 = vrot.slane %v282_v43, 4  ;;  %v617_v60 = vsel %vm613_vm1, %v268_v36, %v440_v40 }
  0xf5   :  { %v213_v38 = vmax.f32 %v175_v28, 0.0  ;;  %v178_v39 = vadd.f32 %v3098_v62, %v177_v34  ;;  %v447_v51 = vrot.slane %v298_v46, 4  ;;  %v3121_v52 = vld [vmem:[#allocation2 + $0x29] ss:$2 sm:$0xf]  ;;  %v614_v4 = vsel %vm613_vm1, %v262_v41, %v437_v45  ;;  %v2764_v35 = vld [vmem:[%s3718_s3 + $0x150] sm:$0xff]  }
  0xf6   :  { %256 = vst [vmem:[#allocation2 + $0x83] sm:$0xff] %v215_v32  ;;  %v216_v44 = vmax.f32 %v186_v33, 0.0  ;;  %v3126_v55 = vld [vmem:[#allocation2 + $0x2b] ss:$2 sm:$0xf]  ;;  %v616_v25 = vsel %vm613_vm1, %v266_v10, %v439_v50 }
  0xf7   :  { %254 = vst [vmem:[#allocation2 + $0x6f] sm:$0xff] %v213_v38  ;;  %v214_v47 = vmax.f32 %v178_v39, 0.0  ;;  %v326_v48 = vld [vmem:[#allocation2 + $0x50] ss:$2 sm:$0xf]  ;;  %v3134_v63 = vsel %vm613_vm1, %v282_v43, %v447_v51  ;;  %v2760_v28 = vld [vmem:[%s3718_s3 + $0x148] sm:$0xff]  }
  0xf8   :  { %257 = vst [vmem:[#allocation2 + $0x8d] sm:$0xff] %v216_v44  ;;  %v3123_v53 = vld [vmem:[#allocation2 + $0x3d] ss:$2 sm:$0xf]  ;;  %v493_v3 = vrot.slane %v326_v48, 4  ;;  %v2762_v32 = vld [vmem:[%s3718_s3 + $0x108] sm:$0xff]  }
  0xf9   :  { %v3128_v56 = vld [vmem:[#allocation2 + $0x3f] ss:$2 sm:$0xf]  ;;  %255 = vst [vmem:[#allocation2 + $0x79] sm:$0xff] %v214_v47  ;;  %v2695_v57 = vpop.f32.mrb[12].mxu0  ;;  %v486_v58 = vrot.slane %v3123_v53, 4 }
  0xfa   :  { %v488_v59 = vrot.slane %v3128_v56, 4  ;;  %v310_v61 = vld [vmem:[#allocation2 + $0x3c] ss:$2 sm:$0xf]  ;;  %v199_v0 = vadd.f32 %v2695_v57, %v3098_v62  ;;  %v190_v1 = vpop.f32.mrb[13].mxu0  ;;  %v2763_v34 = vld [vmem:[%s3718_s3 + $0x188] sm:$0xff]  }
  0xfb   :  { %v485_v2 = vrot.slane %v310_v61, 4  ;;  %v3138_v5 = vld [vmem:[#allocation2 + $0x3e] ss:$2 sm:$0xf]  ;;  %v191_v6 = vadd.f32 %v3098_v62, %v190_v1  ;;  %v2696_v7 = vpop.f32.mrb[14].mxu0  ;;  %v631_v8 = vsel %vm613_vm1, %v3121_v52, %v486_v58  ;;  %v3150_v20 = vsel %vm613_vm1, %v310_v61, %v493_v3  ;;  %v2765_v36 = vld [vmem:[%s3718_s3 + $0x1d0] sm:$0xff]  }
  0xfc   :  { %v633_v9 = vsel %vm613_vm1, %v3126_v55, %v488_v59  ;;  %v487_v11 = vrot.slane %v3138_v5, 4  ;;  %v219_v12 = vmax.f32 %v199_v0, 0.0  ;;  %v202_v13 = vadd.f32 %v2696_v7, %v3098_v62  ;;  %v193_v14 = vpop.f32.mrb[15].mxu0  ;;  %v3182_v38 = vld [vmem:[#allocation2 + $0x5a] ss:$2 sm:$0xf] }
  0xfd   :  { %v679_v15 = vpack.c.bf16 %v631_v8, %v615_v54  ;;  %v681_v16 = vpack.c.bf16 %v633_v9, %v617_v60  ;;  %v217_v17 = vmax.f32 %v191_v6, 0.0  ;;  %v194_v18 = vadd.f32 %v3098_v62, %v193_v14  ;;  %v2759_v62 = vld [vmem:[%s3718_s3 + $0x180] sm:$0xff]   ;;  %v2766_v39 = vld [vmem:[%s3718_s3 + $0x110] sm:$0xff]   ;;  %v2768_v43 = vld [vmem:[%s3718_s3 + $0x158] sm:$0xff]  }
  0xfe   :  { %v630_v19 = vsel %vm613_vm1, %v294_v37, %v485_v2  ;;  %260 = vst [vmem:[#allocation2 + $0xab] sm:$0xff] %v219_v12  ;;  %v220_v22 = vmax.f32 %v202_v13, 0.0  ;;  %v632_v26 = vsel %vm613_vm1, %v298_v46, %v487_v11  ;;  %v3180_v37 = vld [vmem:[#allocation2 + $0x1f] ss:$2 sm:$0xf]  ;;  %v2767_v42 = vld [vmem:[%s3718_s3 + $0x190] sm:$0xff]  }
  0xff   :  { %1773 = vmatprep.mubr.bf16.mxu1 %v679_v15  ;;  %1822 = vmatprep.mubr.bf16.mxu0 %v681_v16  ;;  %v678_v23 = vpack.c.bf16 %v630_v19, %v614_v4  ;;  %258 = vst [vmem:[#allocation2 + $0x97] sm:$0xff] %v217_v17  ;;  %v218_v29 = vmax.f32 %v194_v18, 0.0  ;;  %v680_v30 = vpack.c.bf16 %v632_v26, %v616_v25  ;;  %v3199_v45 = vld [vmem:[#allocation2 + $0x47] ss:$2 sm:$0xf]  ;;  %v2769_v46 = vld [vmem:[%s3718_s3 + $0x1d8] sm:$0xff]  }
 0x100   :  { %261 = vst [vmem:[#allocation2 + $0xb5] sm:$0xff] %v220_v22  ;;  %v3187_v40 = vld [vmem:[#allocation2 + $0x79] ss:$2 sm:$0xf]  ;;  %v497_v58 = vrot.slane %v3182_v38, 4  ;;  %v442_v61 = vrot.slane %v3180_v37, 4 }
 0x101   :  { %1774 = vmatmul.mubr.bf16.vlgmr.msra.gmra.mrb[0].mxu1 %v678_v23  ;;  %259 = vst [vmem:[#allocation2 + $0xa1] sm:$0xff] %v218_v29  ;;  %1823 = vmatmul.mubr.bf16.vlgmr.msra.gmra.mrb[16].mxu0 %v680_v30  ;;  %v3189_v41 = vld [vmem:[#allocation2 + $0x7b] ss:$2 sm:$0xf]  ;;  %v534_v50 = vrot.slane %v3187_v40, 4  ;;  %v490_v0 = vrot.slane %v3199_v45, 4 }
 0x102   :  { %2498 = vmatpush3.bf16.msra.mxu1 %v2758_v21  ;;  %2526 = vmatpush3.bf16.msra.mxu0 %v2759_v62  ;;  %v3197_v44 = vld [vmem:[#allocation2 + $0x78] ss:$2 sm:$0xf]  ;;  %v344_v47 = vld [vmem:[#allocation2 + $0x65] ss:$2 sm:$0xf] }
 0x103   :  { %2499 = vmatprep.subr.bf16.mxu1 %v2760_v28  ;;  %2527 = vmatprep.subr.bf16.mxu0 %v2761_v31  ;;  %v348_v48 = vld [vmem:[#allocation2 + $0x67] ss:$2 sm:$0xf]  ;;  %v536_v51 = vrot.slane %v3189_v41, 4  ;;  %v2770_v59 = vld [vmem:[%s3718_s3 + $0x118] sm:$0xff]   ;;  %v533_v60 = vrot.slane %v3197_v44, 4  ;;  %v647_v17 = vsel %vm613_vm1, %v344_v47, %v534_v50 }
 0x104   :  { %v342_v54 = vld [vmem:[#allocation2 + $0x64] ss:$2 sm:$0xf]  ;;  %v3206_v57 = vld [vmem:[#allocation2 + $0x7a] ss:$2 sm:$0xf] }
 0x105   :  { %v3215_v1 = vld [vmem:[#allocation2 + $0x21] ss:$2 sm:$0xf]  ;;  %v3217_v2 = vld [vmem:[#allocation2 + $0x8d] ss:$2 sm:$0xf]  ;;  %v649_v18 = vsel %vm613_vm1, %v348_v48, %v536_v51  ;;  %v646_v29 = vsel %vm613_vm1, %v342_v54, %v533_v60 }
 0x106   :  { %2500 = vmatpush3.bf16.msra.mxu1 %v2762_v32  ;;  %2528 = vmatpush3.bf16.msra.mxu0 %v2763_v34  ;;  %v3221_v4 = vld [vmem:[#allocation2 + $0x8f] ss:$2 sm:$0xf]  ;;  %v346_v7 = vld [vmem:[#allocation2 + $0x66] ss:$2 sm:$0xf] }
 0x107   :  { %2501 = vmatprep.subr.bf16.mxu1 %v2764_v35  ;;  %2529 = vmatprep.subr.bf16.mxu0 %v2765_v36  ;;  %v3225_v8 = vld [vmem:[#allocation2 + $0x33] ss:$2 sm:$0xf]  ;;  %v3229_v11 = vld [vmem:[#allocation2 + $0x8c] ss:$2 sm:$0xf] }
 0x108   :  { %v3219_v3 = vld [vmem:[#allocation2 + $0xa1] ss:$2 sm:$0xf]  ;;  %v3231_v12 = vld [vmem:[#allocation2 + $0xa0] ss:$2 sm:$0xf]  ;;  %v635_v51 = vsel %vm613_vm1, %v3225_v8, %v490_v0 }
 0x109   :  { %v3223_v6 = vld [vmem:[#allocation2 + $0xa3] ss:$2 sm:$0xf]  ;;  %v582_v9 = vrot.slane %v3219_v3, 4  ;;  %v535_v13 = vrot.slane %v3206_v57, 4  ;;  %v2771_v16 = vld [vmem:[%s3718_s3 + $0x198] sm:$0xff]  }
 0x10a   :  { %2502 = vmatpush3.bf16.msra.mxu1 %v2766_v39  ;;  %v584_v10 = vrot.slane %v3223_v6, 4  ;;  %v3234_v14 = vld [vmem:[#allocation2 + $0x35] ss:$2 sm:$0xf]  ;;  %2530 = vmatpush3.bf16.msra.mxu0 %v2767_v42  ;;  %v581_v19 = vrot.slane %v3231_v12, 4  ;;  %v444_v23 = vrot.slane %v3215_v1, 4 }
 0x10b   :  { %v3236_v15 = vld [vmem:[#allocation2 + $0x5c] ss:$2 sm:$0xf]  ;;  %2503 = vmatprep.subr.bf16.mxu1 %v2768_v43  ;;  %v272_v22 = vld [vmem:[#allocation2 + $0xb] ss:$2 sm:$0xf]  ;;  %2531 = vmatprep.subr.bf16.mxu0 %v2769_v46  ;;  %v663_v25 = vsel %vm613_vm1, %v3217_v2, %v582_v9  ;;  %v648_v48 = vsel %vm613_vm1, %v346_v7, %v535_v13 }
 0x10c   :  { %v3244_v21 = vld [vmem:[#allocation2 + $0xa2] ss:$2 sm:$0xf]  ;;  %v665_v26 = vsel %vm613_vm1, %v3221_v4, %v584_v10  ;;  %v3259_v31 = vld [vmem:[#allocation2 + $0x49] ss:$2 sm:$0xf]  ;;  %v695_v32 = vpack.c.bf16 %v663_v25, %v647_v17  ;;  %v662_v35 = vsel %vm613_vm1, %v3229_v11, %v581_v19  ;;  %v619_v0 = vsel %vm613_vm1, %v272_v22, %v442_v61 }
 0x10d   :  { %v2772_v62 = vld [vmem:[%s3718_s3 + $0x160] sm:$0xff]   ;;  %v583_v30 = vrot.slane %v3244_v21, 4  ;;  %v697_v34 = vpack.c.bf16 %v665_v26, %v649_v18  ;;  %v3263_v36 = vld [vmem:[#allocation2 + $0x8e] ss:$2 sm:$0xf]  ;;  %v492_v43 = vrot.slane %v3259_v31, 4  ;;  %v694_v47 = vpack.c.bf16 %v662_v35, %v646_v29 }
 0x10e   :  { %v2773_v28 = vld [vmem:[%s3718_s3 + $0x1e0] sm:$0xff]   ;;  %2504 = vmatpush3.bf16.msra.mxu1 %v2770_v59  ;;  %v276_v54 = vld [vmem:[#allocation2 + $0xd] ss:$2 sm:$0xf]  ;;  %2532 = vmatpush3.bf16.msra.mxu0 %v2771_v16  ;;  %v499_v17 = vrot.slane %v3236_v15, 4  ;;  %v683_v15 = vpack.c.bf16 %v635_v51, %v619_v0 }
 0x10f   :  { %v2774_v39 = vld [vmem:[%s3718_s3 + $0x120] sm:$0xff]   ;;  %v664_v50 = vsel %vm613_vm1, %v3263_v36, %v583_v30  ;;  %v3279_v60 = vld [vmem:[#allocation2 + $0x32] ss:$2 sm:$0xf]  ;;  %1781 = vmatprep.mubr.bf16.mxu1 %v695_v32  ;;  %v637_v10 = vsel %vm613_vm1, %v3234_v14, %v492_v43  ;;  %v2776_v59 = vld [vmem:[%s3718_s3 + $0x168] sm:$0xff]   ;;  %1830 = vmatprep.mubr.bf16.mxu0 %v697_v34  ;;  %v621_v61 = vsel %vm613_vm1, %v276_v54, %v444_v23 }
 0x110   :  { %v2775_v42 = vld [vmem:[%s3718_s3 + $0x1a0] sm:$0xff]   ;;  %v696_v9 = vpack.c.bf16 %v664_v50, %v648_v48  ;;  %v449_v13 = vrot.slane %v3279_v60, 4  ;;  %2505 = vmatprep.subr.bf16.mxu1 %v2772_v62  ;;  %v2777_v16 = vld [vmem:[%s3718_s3 + $0x1e8] sm:$0xff]   ;;  %2533 = vmatprep.subr.bf16.mxu0 %v2773_v28  ;;  %v3309_v26 = vld [vmem:[#allocation2 + $0x34] ss:$2 sm:$0xf] }
 0x111   :  { %v3272_v46 = vld [vmem:[#allocation2 + $0xbf] ss:$2 sm:$0xf]  ;;  %v3286_v7 = vld [vmem:[#allocation2 + $0x46] ss:$2 sm:$0xf]  ;;  %1782 = vmatmul.mubr.bf16.gmra.mrb[4].mxu1 %v694_v47 }
 0x112   :  { %v2778_v18 = vld [vmem:[%s3718_s3 + $0x128] sm:$0xff]   ;;  %v3297_v19 = vld [vmem:[#allocation2 + $0x1e] ss:$2 sm:$0xf]  ;;  %v3303_v25 = vsel %vm613_vm1, %v3286_v7, %v497_v58  ;;  %1831 = vmatmul.mubr.bf16.gmra.mrb[20].mxu0 %v696_v9  ;;  %2506 = vmatpush3.bf16.msra.mxu1 %v2774_v39  ;;  %v685_v58 = vpack.c.bf16 %v637_v10, %v621_v61  ;;  %v2780_v28 = vld [vmem:[%s3718_s3 + $0x170] sm:$0xff]   ;;  %v451_v23 = vrot.slane %v3309_v26, 4 }
 0x113   :  { %v2779_v22 = vld [vmem:[%s3718_s3 + $0x1a8] sm:$0xff]   ;;  %v3313_v62 = vsel %vm613_vm1, %v3297_v19, %v449_v13  ;;  %v420_v38 = vld [vmem:[#allocation2 + $0xc1] ss:$2 sm:$0xf]  ;;  %v594_v32 = vrot.slane %v3272_v46, 4  ;;  %2534 = vmatpush3.bf16.msra.mxu0 %v2775_v42  ;;  %1871 = vmatprep.mubr.bf16.mxu1 %v683_v15  ;;  %v2781_v43 = vld [vmem:[%s3718_s3 + $0x1f0] sm:$0xff]  }
 0x114   :  { %3728 = vst [vmem:[#allocation6_spill] sm:$0xff] %v3313_v62  ;;  %v3318_v29 = vld [vmem:[#allocation2 + $0x48] ss:$2 sm:$0xf]  ;;  %1920 = vmatprep.mubr.bf16.mxu0 %v685_v58  ;;  %2507 = vmatprep.subr.bf16.mxu1 %v2776_v59  ;;  %v2782_v47 = vld [vmem:[%s3718_s3 + $0x130] sm:$0xff]   ;;  %v2784_v50 = vld [vmem:[%s3718_s3 + $0x178] sm:$0xff]  }
 0x115   :  { %v3324_v34 = vld [vmem:[#allocation2 + $0x20] ss:$2 sm:$0xf]  ;;  %v3328_v35 = vsel %vm613_vm1, %v3318_v29, %v499_v17  ;;  %v384_v46 = vld [vmem:[#allocation2 + $0x97] ss:$2 sm:$0xf]  ;;  %2535 = vmatprep.subr.bf16.mxu0 %v2777_v16 }
 0x116   :  { %3729 = vst [vmem:[#allocation7_spill] sm:$0xff] %v3328_v35  ;;  %v414_v39 = vld [vmem:[#allocation2 + $0xbe] ss:$2 sm:$0xf]  ;;  %v3338_v42 = vsel %vm613_vm1, %v3324_v34, %v451_v23  ;;  %v2783_v48 = vld [vmem:[%s3718_s3 + $0x1b0] sm:$0xff]   ;;  %v546_v54 = vrot.slane %v384_v46, 4  ;;  %2508 = vmatpush3.bf16.msra.mxu1 %v2778_v18 }
 0x117   :  { %3730 = vst [vmem:[#allocation8_spill] sm:$0xff] %v3338_v42  ;;  %v400_v51 = vld [vmem:[#allocation2 + $0xab] ss:$2 sm:$0xf]  ;;  %v596_v10 = vrot.slane %v420_v38, 4  ;;  %v2785_v59 = vld [vmem:[%s3718_s3 + $0x1f8] sm:$0xff]   ;;  %2536 = vmatpush3.bf16.msra.mxu0 %v2779_v22  ;;  %2509 = vmatprep.subr.bf16.mxu1 %v2780_v28 }
 0x118   :  { %v489_v13 = vrot.slane %v3286_v7, 4  ;;  %v368_v17 = vld [vmem:[#allocation2 + $0x83] ss:$2 sm:$0xf]  ;;  %v3353_v0 = vsel %vm613_vm1, %v400_v51, %v594_v32  ;;  %v593_v16 = vrot.slane %v414_v39, 4  ;;  %2537 = vmatprep.subr.bf16.mxu0 %v2781_v43  ;;  %v441_v18 = vrot.slane %v3297_v19, 4 }
 0x119   :  { %3731 = vst [vmem:[#allocation9_spill] sm:$0xff] %v3353_v0  ;;  %v418_v15 = vld [vmem:[#allocation2 + $0xc0] ss:$2 sm:$0xf]  ;;  %v3356_v23 = vsel %vm613_vm1, %v368_v17, %v546_v54  ;;  %v491_v38 = vrot.slane %v3318_v29, 4  ;;  %v2786_v22 = vld [vmem:[%s3718_s3 + $0x138] sm:$0xff]  }
 0x11a   :  { %v270_v61 = vld [vmem:[#allocation2 + $0xa] ss:$2 sm:$0xf]  ;;  %v388_v58 = vld [vmem:[#allocation2 + $0x99] ss:$2 sm:$0xf]  ;;  %2510 = vmatpush3.bf16.msra.mxu1 %v2782_v47  ;;  %v634_v29 = vsel %vm613_vm1, %v3279_v60, %v489_v13 }
 0x11b   :  { %3732 = vst [vmem:[#allocation10_spill] sm:$0xff] %v3356_v23  ;;  %v404_v9 = vld [vmem:[#allocation2 + $0xad] ss:$2 sm:$0xf]  ;;  %v548_v7 = vrot.slane %v388_v58, 4  ;;  %v2787_v28 = vld [vmem:[%s3718_s3 + $0x1b8] sm:$0xff]   ;;  %2538 = vmatpush3.bf16.msra.mxu0 %v2783_v48  ;;  %2511 = vmatprep.subr.bf16.mxu1 %v2784_v50  ;;  %v618_v13 = vsel %vm613_vm1, %v270_v61, %v441_v18 }
 0x11c   :  { %v274_v39 = vld [vmem:[#allocation2 + $0xc] ss:$2 sm:$0xf]  ;;  %v586_v54 = vrot.slane %v400_v51, 4  ;;  %v3369_v19 = vsel %vm613_vm1, %v404_v9, %v596_v10  ;;  %v443_v32 = vrot.slane %v3324_v34, 4  ;;  %v2788_v30 = vld [vmem:[%s3718_s3 + $0x240] sm:$0xff]   ;;  %2539 = vmatprep.subr.bf16.mxu0 %v2785_v59  ;;  %v682_v35 = vpack.c.bf16 %v634_v29, %v618_v13 }
 0x11d   :  { %v372_v43 = vld [vmem:[#allocation2 + $0x85] ss:$2 sm:$0xf]  ;;  %v352_v33 = vld [vmem:[#allocation2 + $0x6f] ss:$2 sm:$0xf] }
 0x11e   :  { %v588_v23 = vrot.slane %v404_v9, 4  ;;  %v3377_v0 = vld [vmem:[#allocation2 + $0x96] ss:$2 sm:$0xf]  ;;  %v3380_v51 = vsel %vm613_vm1, %v372_v43, %v548_v7  ;;  %v538_v10 = vrot.slane %v368_v17, 4  ;;  %v595_v34 = vrot.slane %v418_v15, 4  ;;  %2512 = vmatpush3.bf16.msra.mxu1 %v2786_v22 }
 0x11f   :  { %v398_v47 = vld [vmem:[#allocation2 + $0xaa] ss:$2 sm:$0xf]  ;;  %v545_v42 = vrot.slane %v3377_v0, 4  ;;  %v636_v9 = vsel %vm613_vm1, %v3309_v26, %v491_v38  ;;  %v2789_v7 = vld [vmem:[%s3718_s3 + $0x2c0] sm:$0xff]   ;;  %v540_v48 = vrot.slane %v372_v43, 4  ;;  %v667_v62 = vsel %vm613_vm1, %v384_v46, %v586_v54  ;;  %2540 = vmatpush3.bf16.msra.mxu0 %v2787_v28  ;;  %2553 = vmatprep.subr.bf16.mxu1 %v2788_v30 }
 0x120   :  { %v366_v50 = vld [vmem:[#allocation2 + $0x82] ss:$2 sm:$0xf]  ;;  %v3392_v17 = vsel %vm613_vm1, %v398_v47, %v593_v16  ;;  %v356_v60 = vld [vmem:[#allocation2 + $0x71] ss:$2 sm:$0xf]  ;;  %v620_v26 = vsel %vm613_vm1, %v274_v39, %v443_v32  ;;  %v669_v61 = vsel %vm613_vm1, %v388_v58, %v588_v23  ;;  %2581 = vmatprep.subr.bf16.mxu0 %v2789_v7 }
 0x121   :  { %v386_v15 = vld [vmem:[#allocation2 + $0x98] ss:$2 sm:$0xf]  ;;  %v3396_v59 = vsel %vm613_vm1, %v366_v50, %v545_v42  ;;  %v2790_v18 = vld [vmem:[%s3718_s3 + $0x200] sm:$0xff]   ;;  %v684_v46 = vpack.c.bf16 %v636_v9, %v620_v26  ;;  %v651_v42 = vsel %vm613_vm1, %v352_v33, %v538_v10  ;;  %v653_v23 = vsel %vm613_vm1, %v356_v60, %v540_v48  ;;  %v2792_v28 = vld [vmem:[%s3718_s3 + $0x248] sm:$0xff]   ;;  %1872 = vmatmul.mubr.bf16.vlgmr.msra.gmra.mrb[8].mxu1 %v682_v35 }
 0x122   :  { %v402_v38 = vld [vmem:[#allocation2 + $0xac] ss:$2 sm:$0xf]  ;;  %v547_v16 = vrot.slane %v386_v15, 4  ;;  %v706_v43 = vpack.c.bf16 %v3392_v17, %v3396_v59  ;;  %v699_v58 = vpack.c.bf16 %v667_v62, %v651_v42  ;;  %v2791_v39 = vld [vmem:[%s3718_s3 + $0x280] sm:$0xff]   ;;  %v585_v30 = vrot.slane %v398_v47, 4  ;;  %2554 = vmatpush3.bf16.msra.mxu1 %v2790_v18 }
 0x123   :  { %v370_v54 = vld [vmem:[#allocation2 + $0x84] ss:$2 sm:$0xf]  ;;  %v328_v22 = vld [vmem:[#allocation2 + $0x51] ss:$2 sm:$0xf]  ;;  %v3407_v32 = vsel %vm613_vm1, %v402_v38, %v595_v34  ;;  %v701_v10 = vpack.c.bf16 %v669_v61, %v653_v23  ;;  %1921 = vmatmul.mubr.bf16.vlgmr.msra.gmra.mrb[24].mxu0 %v684_v46  ;;  %2555 = vmatprep.subr.bf16.mxu1 %v2792_v28 }
 0x124   :  { %v332_v29 = vld [vmem:[#allocation2 + $0x53] ss:$2 sm:$0xf]  ;;  %v3417_v33 = vsel %vm613_vm1, %v370_v54, %v547_v16  ;;  %v2793_v62 = vld [vmem:[%s3718_s3 + $0x2c8] sm:$0xff]   ;;  %v587_v60 = vrot.slane %v402_v38, 4  ;;  %v494_v34 = vrot.slane %v328_v22, 4  ;;  %1879 = vmatprep.mubr.bf16.mxu1 %v699_v58  ;;  %2582 = vmatpush3.bf16.msra.mxu0 %v2791_v39  ;;  %v666_v46 = vsel %vm613_vm1, %v3377_v0, %v585_v30 }
 0x125   :  { %v330_v13 = vld [vmem:[#allocation2 + $0x52] ss:$2 sm:$0xf]  ;;  %v708_v9 = vpack.c.bf16 %v3407_v32, %v3417_v33  ;;  %v537_v7 = vrot.slane %v366_v50, 4  ;;  %v496_v47 = vrot.slane %v332_v29, 4  ;;  %v446_v26 = vrot.slane %v3121_v52, 4  ;;  %1928 = vmatprep.mubr.bf16.mxu0 %v701_v10  ;;  %2583 = vmatprep.subr.bf16.mxu0 %v2793_v62 }
 0x126   :  { %v495_v48 = vrot.slane %v330_v13, 4  ;;  %v2794_v35 = vld [vmem:[%s3718_s3 + $0x208] sm:$0xff]   ;;  %v539_v38 = vrot.slane %v370_v54, 4  ;;  %v448_v16 = vrot.slane %v3126_v55, 4  ;;  %v2796_v18 = vld [vmem:[%s3718_s3 + $0x250] sm:$0xff]   ;;  %v668_v55 = vsel %vm613_vm1, %v386_v15, %v587_v60  ;;  %v2800_v10 = vld [vmem:[%s3718_s3 + $0x258] sm:$0xff]  }
 0x127   :  { %v350_v61 = vld [vmem:[#allocation2 + $0x6e] ss:$2 sm:$0xf]  ;;  %v639_v22 = vsel %vm613_vm1, %v3123_v53, %v494_v34  ;;  %v641_v23 = vsel %vm613_vm1, %v3128_v56, %v496_v47  ;;  %2556 = vmatpush3.bf16.msra.mxu1 %v2794_v35  ;;  %v623_v28 = vsel %vm613_vm1, %v3108_v24, %v446_v26  ;;  %v2801_v24 = vld [vmem:[%s3718_s3 + $0x2d8] sm:$0xff]   ;;  %v2804_v34 = vld [vmem:[%s3718_s3 + $0x260] sm:$0xff]  }
 0x128   :  { %v2795_v50 = vld [vmem:[%s3718_s3 + $0x288] sm:$0xff]   ;;  %v354_v52 = vld [vmem:[#allocation2 + $0x70] ss:$2 sm:$0xf]  ;;  %v3439_v42 = vsel %vm613_vm1, %v3138_v5, %v495_v48  ;;  %v650_v58 = vsel %vm613_vm1, %v350_v61, %v537_v7  ;;  %2557 = vmatprep.subr.bf16.mxu1 %v2796_v18  ;;  %v687_v30 = vpack.c.bf16 %v639_v22, %v623_v28  ;;  %v625_v56 = vsel %vm613_vm1, %v3111_v27, %v448_v16  ;;  %v2802_v60 = vld [vmem:[%s3718_s3 + $0x218] sm:$0xff]  }
 0x129   :  { %v2797_v54 = vld [vmem:[%s3718_s3 + $0x2d0] sm:$0xff]   ;;  %v688_v0 = vpack.c.bf16 %v3439_v42, %v3134_v63  ;;  %v698_v5 = vpack.c.bf16 %v666_v46, %v650_v58  ;;  %v652_v39 = vsel %vm613_vm1, %v354_v52, %v539_v38  ;;  %2584 = vmatpush3.bf16.msra.mxu0 %v2795_v50  ;;  %v689_v62 = vpack.c.bf16 %v641_v23, %v625_v56  ;;  %v2803_v27 = vld [vmem:[%s3718_s3 + $0x298] sm:$0xff]   ;;  %v2805_v13 = vld [vmem:[%s3718_s3 + $0x2e0] sm:$0xff]  }
 0x12a   :  { %v2798_v15 = vld [vmem:[%s3718_s3 + $0x210] sm:$0xff]   ;;  %v700_v53 = vpack.c.bf16 %v668_v55, %v652_v39  ;;  %2585 = vmatprep.subr.bf16.mxu0 %v2797_v54  ;;  %v2806_v7 = vld [vmem:[%s3718_s3 + $0x220] sm:$0xff]   ;;  %v2808_v48 = vld [vmem:[%s3718_s3 + $0x268] sm:$0xff]   ;;  %v544_v28 = vrot.slane %v3221_v4, 4 }
 0x12b   :  { %v2799_v29 = vld [vmem:[%s3718_s3 + $0x290] sm:$0xff]   ;;  %1880 = vmatmul.mubr.bf16.gmra.mrb[12].mxu1 %v698_v5  ;;  %v2807_v47 = vld [vmem:[%s3718_s3 + $0x2a0] sm:$0xff]   ;;  %v2809_v26 = vld [vmem:[%s3718_s3 + $0x2e8] sm:$0xff]   ;;  %v542_v5 = vrot.slane %v3217_v2, 4 }
 0x12c   :  { %1929 = vmatmul.mubr.bf16.gmra.mrb[28].mxu0 %v700_v53  ;;  %1969 = vmatprep.mubr.bf16.mxu1 %v687_v30  ;;  %v2810_v35 = vld [vmem:[%s3718_s3 + $0x228] sm:$0xff]   ;;  %v2812_v38 = vld [vmem:[%s3718_s3 + $0x270] sm:$0xff]   ;;  %v2816_v18 = vld [vmem:[%s3718_s3 + $0x278] sm:$0xff]  }
 0x12d   :  { %2558 = vmatpush3.bf16.msra.mxu1 %v2798_v15  ;;  %2018 = vmatprep.mubr.bf16.mxu0 %v689_v62  ;;  %v2811_v61 = vld [vmem:[%s3718_s3 + $0x2a8] sm:$0xff]   ;;  %v2813_v16 = vld [vmem:[%s3718_s3 + $0x2f0] sm:$0xff]   ;;  %v2817_v54 = vld [vmem:[%s3718_s3 + $0x2f8] sm:$0xff]  }
 0x12e   :  { %2586 = vmatpush3.bf16.msra.mxu0 %v2799_v29  ;;  %2559 = vmatprep.subr.bf16.mxu1 %v2800_v10  ;;  %v2814_v50 = vld [vmem:[%s3718_s3 + $0x230] sm:$0xff]   ;;  %v2818_v58 = vld [vmem:[%s3718_s3 + $0x238] sm:$0xff]   ;;  %v2820_v15 = vld [vmem:[%s3718_s3 + $0x340] sm:$0xff]   ;;  %v655_v10 = vsel %vm613_vm1, %v3187_v40, %v542_v5  ;;  %v450_v40 = vrot.slane %v3225_v8, 4  ;;  %v543_v8 = vrot.slane %v3263_v36, 4 }
 0x12f   :  { %2587 = vmatprep.subr.bf16.mxu0 %v2801_v24  ;;  %v408_v46 = vld [vmem:[#allocation2 + $0xb5] ss:$2 sm:$0xf]  ;;  %v2821_v53 = vld [vmem:[%s3718_s3 + $0x3c0] sm:$0xff]   ;;  %v2841_v5 = vld [vmem:[%s3718_s3 + $0x3e8] sm:$0xff]  }
 0x130   :  { %v2815_v52 = vld [vmem:[%s3718_s3 + $0x2b0] sm:$0xff]   ;;  %v590_v22 = vrot.slane %v408_v46, 4  ;;  %v2819_v39 = vld [vmem:[%s3718_s3 + $0x2b8] sm:$0xff]   ;;  %v2822_v4 = vld [vmem:[%s3718_s3 + $0x300] sm:$0xff]  }
 0x131   :  { %2560 = vmatpush3.bf16.msra.mxu1 %v2802_v60  ;;  %v412_v55 = vld [vmem:[#allocation2 + $0xb7] ss:$2 sm:$0xf]  ;;  %v406_v30 = vld [vmem:[#allocation2 + $0xb4] ss:$2 sm:$0xf] }
 0x132   :  { %2588 = vmatpush3.bf16.msra.mxu0 %v2803_v27  ;;  %2561 = vmatprep.subr.bf16.mxu1 %v2804_v34  ;;  %v592_v23 = vrot.slane %v412_v55, 4  ;;  %v671_v2 = vsel %vm613_vm1, %v3219_v3, %v590_v22  ;;  %v410_v56 = vld [vmem:[#allocation2 + $0xb6] ss:$2 sm:$0xf]  ;;  %v657_v3 = vsel %vm613_vm1, %v3189_v41, %v544_v28  ;;  %v2823_v24 = vld [vmem:[%s3718_s3 + $0x380] sm:$0xff]   ;;  %v589_v60 = vrot.slane %v406_v30, 4 }
 0x133   :  { %2589 = vmatprep.subr.bf16.mxu0 %v2805_v13  ;;  %v703_v62 = vpack.c.bf16 %v671_v2, %v655_v10  ;;  %v336_v27 = vld [vmem:[#allocation2 + $0x5b] ss:$2 sm:$0xf]  ;;  %v3733_v34 = vpack.c.bf16 %v3150_v20, %v3119_v49  ;;  %v2825_v41 = vld [vmem:[%s3718_s3 + $0x3c8] sm:$0xff]   ;;  %v2844_v28 = vld [vmem:[%s3718_s3 + $0x370] sm:$0xff]  }
 0x134   :  { %v673_v29 = vsel %vm613_vm1, %v3223_v6, %v592_v23  ;;  %v2824_v6 = vld [vmem:[%s3718_s3 + $0x348] sm:$0xff]   ;;  %v498_v20 = vrot.slane %v336_v27, 4  ;;  %v670_v63 = vsel %vm613_vm1, %v3231_v12, %v589_v60  ;;  %v2836_v55 = vld [vmem:[%s3718_s3 + $0x360] sm:$0xff]   ;;  %v2846_v2 = vld [vmem:[%s3718_s3 + $0x330] sm:$0xff]  }
 0x135   :  { %2562 = vmatpush3.bf16.msra.mxu1 %v2806_v7  ;;  %v705_v13 = vpack.c.bf16 %v673_v29, %v657_v3  ;;  %v591_v7 = vrot.slane %v410_v56, 4  ;;  %v2826_v49 = vld [vmem:[%s3718_s3 + $0x308] sm:$0xff]   ;;  %v2838_v22 = vld [vmem:[%s3718_s3 + $0x320] sm:$0xff]   ;;  %v2847_v30 = vld [vmem:[%s3718_s3 + $0x3b0] sm:$0xff]  }
 0x136   :  { %2590 = vmatpush3.bf16.msra.mxu0 %v2807_v47  ;;  %2563 = vmatprep.subr.bf16.mxu1 %v2808_v48  ;;  %v340_v47 = vld [vmem:[#allocation2 + $0x5d] ss:$2 sm:$0xf]  ;;  %v541_v48 = vrot.slane %v3229_v11, 4  ;;  %v2827_v11 = vld [vmem:[%s3718_s3 + $0x388] sm:$0xff]  }
 0x137   :  { %2591 = vmatprep.subr.bf16.mxu0 %v2809_v26  ;;  %v452_v26 = vrot.slane %v3234_v14, 4  ;;  %v2828_v14 = vld [vmem:[%s3718_s3 + $0x350] sm:$0xff]   ;;  %v500_v36 = vrot.slane %v340_v47, 4  ;;  %v672_v42 = vsel %vm613_vm1, %v3244_v21, %v591_v7  ;;  %v2840_v23 = vld [vmem:[%s3718_s3 + $0x368] sm:$0xff]   ;;  %v2848_v29 = vld [vmem:[%s3718_s3 + $0x378] sm:$0xff]  }
 0x138   :  { %v2830_v21 = vld [vmem:[%s3718_s3 + $0x310] sm:$0xff]   ;;  %v2849_v56 = vld [vmem:[%s3718_s3 + $0x3f8] sm:$0xff]   ;;  %v3739_v27 = vld [vmem:[#allocation9_spill] sm:$0xff] }
 0x139   :  { %2564 = vmatpush3.bf16.msra.mxu1 %v2810_v35  ;;  %v627_v35 = vsel %vm613_vm1, %v3180_v37, %v450_v40  ;;  %v629_v12 = vsel %vm613_vm1, %v3215_v1, %v452_v26  ;;  %v645_v1 = vsel %vm613_vm1, %v3259_v31, %v500_v36  ;;  %v2835_v31 = vld [vmem:[%s3718_s3 + $0x398] sm:$0xff]   ;;  %v3740_v40 = vld [vmem:[#allocation10_spill] sm:$0xff]  ;;  %v2856_v17 = vld [vmem:[%s3720_s5 + $0x20] sm:$0xff]  }
 0x13a   :  { %2592 = vmatpush3.bf16.msra.mxu0 %v2811_v61  ;;  %2565 = vmatprep.subr.bf16.mxu1 %v2812_v38  ;;  %v654_v61 = vsel %vm613_vm1, %v3197_v44, %v541_v48  ;;  %v2831_v44 = vld [vmem:[%s3718_s3 + $0x390] sm:$0xff]   ;;  %v2850_v10 = vld [vmem:[%s3718_s3 + $0x338] sm:$0xff]   ;;  %v2857_v59 = vld [vmem:[%s3720_s5 + $0x28] sm:$0xff]  }
 0x13b   :  { %2593 = vmatprep.subr.bf16.mxu0 %v2813_v16  ;;  %v702_v38 = vpack.c.bf16 %v670_v63, %v654_v61  ;;  %v656_v16 = vsel %vm613_vm1, %v3206_v57, %v543_v8  ;;  %v2832_v57 = vld [vmem:[%s3718_s3 + $0x358] sm:$0xff]   ;;  %v2292_v7 = vld [vmem:[%s3719_s4] ss:$0 sm:$0xff] }
 0x13c   :  { %v704_v37 = vpack.c.bf16 %v672_v42, %v656_v16  ;;  %v2859_v32 = vld [vmem:[%s3720_s5 + $0x38] sm:$0xff]  }
 0x13d   :  { %2566 = vmatpush3.bf16.msra.mxu1 %v2814_v50  ;;  %v643_v50 = vsel %vm613_vm1, %v3199_v45, %v498_v20  ;;  %v2833_v45 = vld [vmem:[%s3718_s3 + $0x3d8] sm:$0xff]  }
 0x13e   :  { %2594 = vmatpush3.bf16.msra.mxu0 %v2815_v52  ;;  %2567 = vmatprep.subr.bf16.mxu1 %v2816_v18  ;;  %v691_v46 = vpack.c.bf16 %v643_v50, %v627_v35  ;;  %v693_v52 = vpack.c.bf16 %v645_v1, %v629_v12  ;;  %v2834_v18 = vld [vmem:[%s3718_s3 + $0x318] sm:$0xff]  }
 0x13f   :  { %2595 = vmatprep.subr.bf16.mxu0 %v2817_v54  ;;  %v2837_v54 = vld [vmem:[%s3718_s3 + $0x3e0] sm:$0xff]  }
 0x141   :  { %2568 = vmatpush3.bf16.msra.mxu1 %v2818_v58  ;;  %v2839_v58 = vld [vmem:[%s3718_s3 + $0x3a0] sm:$0xff]  }
 0x142   :  { %2596 = vmatpush3.bf16.msra.mxu0 %v2819_v39  ;;  %2609 = vmatprep.subr.bf16.mxu1 %v2820_v15  ;;  %v2842_v39 = vld [vmem:[%s3718_s3 + $0x328] sm:$0xff]  }
 0x143   :  { %2637 = vmatprep.subr.bf16.mxu0 %v2821_v53  ;;  %v2843_v15 = vld [vmem:[%s3718_s3 + $0x3a8] sm:$0xff]   ;;  %v2845_v53 = vld [vmem:[%s3718_s3 + $0x3f0] sm:$0xff]  }
 0x144   :  { %1970 = vmatmul.mubr.bf16.vlgmr.msra.gmra.mrb[16].mxu1 %v3733_v34  ;;  %v3741_v34 = vpack.c.bf16 %v3739_v27, %v3740_v40 }
 0x145   :  { %2019 = vmatmul.mubr.bf16.vlgmr.msra.gmra.mrb[32].mxu0 %v688_v0  ;;  %1977 = vmatprep.mubr.bf16.mxu1 %v703_v62  ;;  %v2829_v0 = vld [vmem:[%s3718_s3 + $0x3d0] sm:$0xff]   ;;  %v3734_v62 = vld [vmem:[#allocation6_spill] sm:$0xff] }
 0x146   :  { %2026 = vmatprep.mubr.bf16.mxu0 %v705_v13  ;;  %2610 = vmatpush3.bf16.msra.mxu1 %v2822_v4  ;;  %v2851_v4 = vld [vmem:[%s3718_s3 + $0x3b8] sm:$0xff]   ;;  %v3735_v3 = vpack.c.bf16 %v3303_v25, %v3734_v62  ;;  %v3742_v13 = vpack.c.bf16 %v3369_v19, %v3380_v51  ;;  %v2852_v25 = vld [vmem:[%s3720_s5] sm:$0xff]   ;;  %v2854_v19 = vld [vmem:[%s3720_s5 + $0x10] sm:$0xff]  }
 0x147   :  { %2638 = vmatpush3.bf16.msra.mxu0 %v2823_v24  ;;  %2611 = vmatprep.subr.bf16.mxu1 %v2824_v6  ;;  %v3736_v24 = vld [vmem:[#allocation7_spill] sm:$0xff]  ;;  %v3737_v6 = vld [vmem:[#allocation8_spill] sm:$0xff] }
 0x148   :  { %2639 = vmatprep.subr.bf16.mxu0 %v2825_v41  ;;  %v3738_v60 = vpack.c.bf16 %v3736_v24, %v3737_v6  ;;  %v2853_v41 = vld [vmem:[%s3720_s5 + $0x8] sm:$0xff]   ;;  %v2855_v51 = vld [vmem:[%s3720_s5 + $0x18] sm:$0xff]  }
 0x14a   :  { %2612 = vmatpush3.bf16.msra.mxu1 %v2826_v49 }
 0x14b   :  { %2640 = vmatpush3.bf16.msra.mxu0 %v2827_v11  ;;  %2613 = vmatprep.subr.bf16.mxu1 %v2828_v14 }
 0x14c   :  { %1978 = vmatmul.mubr.bf16.gmra.mrb[20].mxu1 %v702_v38  ;;  %2641 = vmatprep.subr.bf16.mxu0 %v2829_v0 }
 0x14d   :  { %2027 = vmatmul.mubr.bf16.gmra.mrb[36].mxu0 %v704_v37  ;;  %2067 = vmatprep.mubr.bf16.mxu1 %v691_v46 }
 0x14e   :  { %2614 = vmatpush3.bf16.msra.mxu1 %v2830_v21  ;;  %2116 = vmatprep.mubr.bf16.mxu0 %v693_v52 }
 0x14f   :  { %2642 = vmatpush3.bf16.msra.mxu0 %v2831_v44  ;;  %2615 = vmatprep.subr.bf16.mxu1 %v2832_v57 }
 0x150   :  { %2643 = vmatprep.subr.bf16.mxu0 %v2833_v45 }
 0x152   :  { %2616 = vmatpush3.bf16.msra.mxu1 %v2834_v18 }
 0x153   :  { %2644 = vmatpush3.bf16.msra.mxu0 %v2835_v31  ;;  %2617 = vmatprep.subr.bf16.mxu1 %v2836_v55 }
 0x154   :  { %2645 = vmatprep.subr.bf16.mxu0 %v2837_v54 }
 0x156   :  { %2618 = vmatpush3.bf16.msra.mxu1 %v2838_v22 }
 0x157   :  { %2646 = vmatpush3.bf16.msra.mxu0 %v2839_v58  ;;  %2619 = vmatprep.subr.bf16.mxu1 %v2840_v23 }
 0x158   :  { %2647 = vmatprep.subr.bf16.mxu0 %v2841_v5 }
 0x15a   :  { %2620 = vmatpush3.bf16.msra.mxu1 %v2842_v39 }
 0x15b   :  { %2648 = vmatpush3.bf16.msra.mxu0 %v2843_v15  ;;  %2621 = vmatprep.subr.bf16.mxu1 %v2844_v28 }
 0x15c   :  { %2649 = vmatprep.subr.bf16.mxu0 %v2845_v53 }
 0x15e   :  { %2622 = vmatpush3.bf16.msra.mxu1 %v2846_v2 }
 0x15f   :  { %2650 = vmatpush3.bf16.msra.mxu0 %v2847_v30  ;;  %2623 = vmatprep.subr.bf16.mxu1 %v2848_v29 }
 0x160   :  { %2651 = vmatprep.subr.bf16.mxu0 %v2849_v56 }
 0x162   :  { %2624 = vmatpush3.bf16.msra.mxu1 %v2850_v10 }
 0x163   :  { %2652 = vmatpush3.bf16.msra.mxu0 %v2851_v4  ;;  %2697 = vmatprep.subr.bf16.mxu1 %v2852_v25 }
 0x165   :  { %2068 = vmatmul.mubr.bf16.vlgmr.msra.gmra.mrb[24].mxu1 %v3735_v3 }
 0x166   :  { %2117 = vmatmul.mubr.bf16.vlgmr.msra.gmra.mrb[40].mxu0 %v3738_v60  ;;  %2075 = vmatprep.mubr.bf16.mxu1 %v3741_v34 }
 0x167   :  { %2124 = vmatprep.mubr.bf16.mxu0 %v3742_v13  ;;  %2698 = vmatpush3.bf16.msra.mxu1 %v2852_v25 }
 0x168   :  { %2699 = vmatprep.subr.bf16.mxu1 %v2853_v41 }
 0x16b   :  { %2700 = vmatpush3.bf16.msra.mxu1 %v2853_v41 }
 0x16c   :  { %2701 = vmatprep.subr.bf16.mxu1 %v2854_v19 }
 0x16d   :  { %2076 = vmatmul.mubr.bf16.gmra.mrb[28].mxu1 %v706_v43  ;;  %v2858_v43 = vld [vmem:[%s3720_s5 + $0x30] sm:$0xff]  }
 0x16e   :  { %2125 = vmatmul.mubr.bf16.gmra.mrb[44].mxu0 %v708_v9 }
 0x16f   :  { %2702 = vmatpush3.bf16.msra.mxu1 %v2854_v19 }
 0x170   :  { %2703 = vmatprep.subr.bf16.mxu1 %v2855_v51 }
 0x173   :  { %2704 = vmatpush3.bf16.msra.mxu1 %v2855_v51 }
 0x174   :  { %2705 = vmatprep.subr.bf16.mxu1 %v2856_v17 }
 0x177   :  { %2706 = vmatpush3.bf16.msra.mxu1 %v2856_v17 }
 0x178   :  { %2707 = vmatprep.subr.bf16.mxu1 %v2857_v59 }
 0x17b   :  { %2708 = vmatpush3.bf16.msra.mxu1 %v2857_v59 }
 0x17c   :  { %2709 = vmatprep.subr.bf16.mxu1 %v2858_v43 }
 0x17f   :  { %2710 = vmatpush3.bf16.msra.mxu1 %v2858_v43 }
 0x180   :  { %2711 = vmatprep.subr.bf16.mxu1 %v2859_v32 }
 0x183   :  { %2712 = vmatpush3.bf16.msra.mxu1 %v2859_v32 }
 0x1d4   :  { %v2457_v33 = vpop.f32.mrb[0].mxu1  ;;  %v2485_v9 = vpop.f32.mrb[16].mxu0 }
 0x1d5   :  { %v2458_v47 = vpop.f32.mrb[1].mxu1  ;;  %v2486_v26 = vpop.f32.mrb[17].mxu0 }
 0x1d6   :  { %v2459_v48 = vadd.f32 %v2458_v47, %v2457_v33  ;;  %v2460_v8 = vpop.f32.mrb[2].mxu1  ;;  %v2487_v49 = vadd.f32 %v2486_v26, %v2485_v9  ;;  %v2488_v20 = vpop.f32.mrb[18].mxu0 }
 0x1d7   :  { %v2461_v11 = vpop.f32.mrb[3].mxu1  ;;  %v2489_v36 = vpop.f32.mrb[19].mxu0 }
 0x1d8   :  { %v1776_v63 = vadd.f32 %v2459_v48, %v2292_v7  ;;  %v2462_v14 = vadd.f32 %v2461_v11, %v2460_v8  ;;  %v2490_v42 = vadd.f32 %v2489_v36, %v2488_v20 }
 0x1da   :  { %v1825_v0 = vadd.f32 %v2487_v49, %v1776_v63  ;;  %v1779_v35 = vadd.f32 %v2462_v14, %v2292_v7 }
 0x1dc   :  { %v1828_v61 = vadd.f32 %v2490_v42, %v1779_v35 }
 0x1e4   :  { %v2463_v12 = vpop.f32.mrb[4].mxu1 }
 0x1e5   :  { %v2491_v38 = vpop.f32.mrb[20].mxu0  ;;  %v2464_v16 = vpop.f32.mrb[5].mxu1 }
 0x1e6   :  { %v2465_v21 = vadd.f32 %v2464_v16, %v2463_v12  ;;  %v2492_v50 = vpop.f32.mrb[21].mxu0  ;;  %v2466_v37 = vpop.f32.mrb[6].mxu1 }
 0x1e7   :  { %v2493_v46 = vadd.f32 %v2492_v50, %v2491_v38  ;;  %v2494_v44 = vpop.f32.mrb[22].mxu0  ;;  %v2467_v1 = vpop.f32.mrb[7].mxu1 }
 0x1e8   :  { %v1784_v57 = vadd.f32 %v2465_v21, %v2292_v7  ;;  %v2468_v52 = vadd.f32 %v2467_v1, %v2466_v37  ;;  %v2495_v45 = vpop.f32.mrb[23].mxu0 }
 0x1e9   :  { %v2496_v18 = vadd.f32 %v2495_v45, %v2494_v44 }
 0x1ea   :  { %v1833_v31 = vadd.f32 %v2493_v46, %v1784_v57  ;;  %v1787_v55 = vadd.f32 %v2468_v52, %v2292_v7 }
 0x1ec   :  { %v1836_v54 = vadd.f32 %v2496_v18, %v1787_v55 }
 0x1f4   :  { %v2513_v22 = vpop.f32.mrb[8].mxu1 }
 0x1f5   :  { %v2514_v23 = vpop.f32.mrb[9].mxu1 }
 0x1f6   :  { %v2541_v58 = vpop.f32.mrb[24].mxu0  ;;  %v2515_v5 = vadd.f32 %v2514_v23, %v2513_v22  ;;  %v2516_v15 = vpop.f32.mrb[10].mxu1 }
 0x1f7   :  { %v2542_v39 = vpop.f32.mrb[25].mxu0  ;;  %v2517_v2 = vpop.f32.mrb[11].mxu1 }
 0x1f8   :  { %v2543_v28 = vadd.f32 %v2542_v39, %v2541_v58  ;;  %v2544_v53 = vpop.f32.mrb[26].mxu0  ;;  %v1874_v30 = vadd.f32 %v2515_v5, %v1825_v0  ;;  %v2518_v29 = vadd.f32 %v2517_v2, %v2516_v15 }
 0x1f9   :  { %v2545_v56 = vpop.f32.mrb[27].mxu0 }
 0x1fa   :  { %v2546_v10 = vadd.f32 %v2545_v56, %v2544_v53  ;;  %v1923_v4 = vadd.f32 %v2543_v28, %v1874_v30  ;;  %v1877_v62 = vadd.f32 %v2518_v29, %v1828_v61 }
 0x1fc   :  { %v1926_v3 = vadd.f32 %v2546_v10, %v1877_v62 }
 0x1fe   :  { %v2519_v24 = vpop.f32.mrb[12].mxu1 }
 0x1ff   :  { %v2547_v6 = vpop.f32.mrb[28].mxu0  ;;  %v2520_v60 = vpop.f32.mrb[13].mxu1 }
 0x200   :  { %v2521_v27 = vadd.f32 %v2520_v60, %v2519_v24  ;;  %v2548_v40 = vpop.f32.mrb[29].mxu0  ;;  %v2522_v34 = vpop.f32.mrb[14].mxu1 }
 0x201   :  { %v2549_v13 = vadd.f32 %v2548_v40, %v2547_v6  ;;  %v2550_v25 = vpop.f32.mrb[30].mxu0  ;;  %v2523_v41 = vpop.f32.mrb[15].mxu1 }
 0x202   :  { %v1882_v19 = vadd.f32 %v2521_v27, %v1833_v31  ;;  %v2524_v51 = vadd.f32 %v2523_v41, %v2522_v34  ;;  %v2551_v17 = vpop.f32.mrb[31].mxu0 }
 0x203   :  { %v2552_v59 = vadd.f32 %v2551_v17, %v2550_v25 }
 0x204   :  { %v1931_v43 = vadd.f32 %v2549_v13, %v1882_v19  ;;  %v1885_v32 = vadd.f32 %v2524_v51, %v1836_v54 }
 0x206   :  { %v1934_v33 = vadd.f32 %v2552_v59, %v1885_v32 }
 0x217   :  { %v2569_v9 = vpop.f32.mrb[16].mxu1 }
 0x218   :  { %v2597_v7 = vpop.f32.mrb[32].mxu0  ;;  %v2570_v47 = vpop.f32.mrb[17].mxu1 }
 0x219   :  { %v2571_v48 = vadd.f32 %v2570_v47, %v2569_v9  ;;  %v2598_v26 = vpop.f32.mrb[33].mxu0  ;;  %v2572_v8 = vpop.f32.mrb[18].mxu1 }
 0x21a   :  { %v2599_v49 = vadd.f32 %v2598_v26, %v2597_v7  ;;  %v2600_v20 = vpop.f32.mrb[34].mxu0  ;;  %v2573_v11 = vpop.f32.mrb[19].mxu1 }
 0x21b   :  { %v1972_v63 = vadd.f32 %v2571_v48, %v1923_v4  ;;  %v2574_v14 = vadd.f32 %v2573_v11, %v2572_v8  ;;  %v2601_v36 = vpop.f32.mrb[35].mxu0 }
 0x21c   :  { %v2602_v42 = vadd.f32 %v2601_v36, %v2600_v20 }
 0x21d   :  { %v2021_v0 = vadd.f32 %v2599_v49, %v1972_v63  ;;  %v1975_v35 = vadd.f32 %v2574_v14, %v1926_v3  ;;  %v2421_v49 = vld [vmem:[%s3721_s6] ss:$0 sm:$0xff] }
 0x21f   :  { %v2024_v61 = vadd.f32 %v2602_v42, %v1975_v35  ;;  %v2575_v12 = vpop.f32.mrb[20].mxu1 }
 0x220   :  { %v2603_v38 = vpop.f32.mrb[36].mxu0  ;;  %v2576_v16 = vpop.f32.mrb[21].mxu1 }
 0x221   :  { %v2577_v21 = vadd.f32 %v2576_v16, %v2575_v12  ;;  %v2604_v50 = vpop.f32.mrb[37].mxu0  ;;  %v2578_v37 = vpop.f32.mrb[22].mxu1 }
 0x222   :  { %v2605_v46 = vadd.f32 %v2604_v50, %v2603_v38  ;;  %v2606_v44 = vpop.f32.mrb[38].mxu0  ;;  %v2579_v1 = vpop.f32.mrb[23].mxu1 }
 0x223   :  { %v1980_v57 = vadd.f32 %v2577_v21, %v1931_v43  ;;  %v2580_v52 = vadd.f32 %v2579_v1, %v2578_v37  ;;  %v2607_v45 = vpop.f32.mrb[39].mxu0 }
 0x224   :  { %v2608_v18 = vadd.f32 %v2607_v45, %v2606_v44 }
 0x225   :  { %v2029_v31 = vadd.f32 %v2605_v46, %v1980_v57  ;;  %v1983_v55 = vadd.f32 %v2580_v52, %v1934_v33 }
 0x227   :  { %v2032_v54 = vadd.f32 %v2608_v18, %v1983_v55 }
 0x238   :  { %v2625_v22 = vpop.f32.mrb[24].mxu1 }
 0x239   :  { %v2653_v58 = vpop.f32.mrb[40].mxu0  ;;  %v2626_v23 = vpop.f32.mrb[25].mxu1 }
 0x23a   :  { %v2627_v5 = vadd.f32 %v2626_v23, %v2625_v22  ;;  %v2654_v39 = vpop.f32.mrb[41].mxu0  ;;  %v2628_v15 = vpop.f32.mrb[26].mxu1 }
 0x23b   :  { %v2655_v28 = vadd.f32 %v2654_v39, %v2653_v58  ;;  %v2656_v53 = vpop.f32.mrb[42].mxu0  ;;  %v2629_v2 = vpop.f32.mrb[27].mxu1 }
 0x23c   :  { %v2070_v30 = vadd.f32 %v2627_v5, %v2021_v0  ;;  %v2630_v29 = vadd.f32 %v2629_v2, %v2628_v15  ;;  %v2657_v56 = vpop.f32.mrb[43].mxu0 }
 0x23d   :  { %v2658_v10 = vadd.f32 %v2657_v56, %v2656_v53 }
 0x23e   :  { %v2119_v4 = vadd.f32 %v2655_v28, %v2070_v30  ;;  %v2073_v62 = vadd.f32 %v2630_v29, %v2024_v61 }
 0x240   :  { %v2122_v3 = vadd.f32 %v2658_v10, %v2073_v62  ;;  %v2631_v24 = vpop.f32.mrb[28].mxu1  ;;  %v2133_v27 = vmax.f32 %v2119_v4, 0.0 }
 0x241   :  { %v2659_v6 = vpop.f32.mrb[44].mxu0  ;;  %v2632_v60 = vpop.f32.mrb[29].mxu1 }
 0x242   :  { %v2134_v40 = vmax.f32 %v2122_v3, 0.0  ;;  %v2633_v34 = vadd.f32 %v2632_v60, %v2631_v24  ;;  %v2660_v13 = vpop.f32.mrb[45].mxu0  ;;  %v2634_v25 = vpop.f32.mrb[30].mxu1 }
 0x243   :  { %v2661_v41 = vadd.f32 %v2660_v13, %v2659_v6  ;;  %v2662_v19 = vpop.f32.mrb[46].mxu0  ;;  %v2635_v51 = vpop.f32.mrb[31].mxu1 }
 0x244   :  { %v2078_v17 = vadd.f32 %v2633_v34, %v2029_v31  ;;  %v2636_v59 = vadd.f32 %v2635_v51, %v2634_v25  ;;  %v2663_v43 = vpop.f32.mrb[47].mxu0  ;;  %v2137_v32 = vpack.c.bf16 %v2134_v40, %v2133_v27 }
 0x245   :  { %v2664_v33 = vadd.f32 %v2663_v43, %v2662_v19 }
 0x246   :  { %v2127_v9 = vadd.f32 %v2661_v41, %v2078_v17  ;;  %v2081_v7 = vadd.f32 %v2636_v59, %v2032_v54  ;;  %2713 = vmatprep.mubr.bf16.mxu1 %v2137_v32 }
 0x248   :  { %v2130_v47 = vadd.f32 %v2664_v33, %v2081_v7  ;;  %v2135_v48 = vmax.f32 %v2127_v9, 0.0 }
 0x24a   :  { %v2136_v26 = vmax.f32 %v2130_v47, 0.0 }
 0x24c   :  { %v2138_v8 = vpack.c.bf16 %v2136_v26, %v2135_v48 }
 0x24e   :  { %2714 = vmatmul.mubr.bf16.vlgmr.msra.gmra.mrb[32].mxu1 %v2138_v8 }
 0x321   :  { %v2715_v20 = vpop.f32.mrb[32].mxu1 }
 0x322   :  { %v2253_v11 = vadd.f32 %v2715_v20, %v2421_v49  ;;  %v2244_v63 = vpop.f32.mrb[33].mxu1 }
 0x323   :  { %v2245_v14 = vadd.f32 %v2421_v49, %v2244_v63  ;;  %v2716_v36 = vpop.f32.mrb[34].mxu1 }
 0x324   :  { %2262 = vst.msk [vmem:[#allocation3 + $0x10] sm:$0xff] %vm2259_vm2, %v2253_v11  ;;  %v2256_v42 = vadd.f32 %v2716_v36, %v2421_v49  ;;  %v2247_v0 = vpop.f32.mrb[35].mxu1 }
 0x325   :  { %2260 = vst.msk [vmem:[#allocation3] sm:$0xff] %vm2259_vm2, %v2245_v14  ;;  %v2248_v35 = vadd.f32 %v2421_v49, %v2247_v0 }
 0x326   :  { %2263 = vst.msk [vmem:[#allocation3 + $0x18] sm:$0xff] %vm2259_vm2, %v2256_v42 }
 0x327   :  { %2261 = vst.msk [vmem:[#allocation3 + $0x8] sm:$0xff] %vm2259_vm2, %v2248_v35 }
 0x328   :  { %2871 = shalt.err (!%p2868_p4)
}
 0x329   :  { %s2872_s10 = scalar_lea.hbm %s3722_s7, 512 }
 0x32a   :  { %p2873_p5 = scmp.ne.s32.totalorder %s3722_s7, %s2872_s10  ;;  %p2876_p6 = scmp.lt.u32.totalorder %s2872_s10, %s3722_s7 }
 0x32c   :  { %p2878_p7 = pnand %p2876_p6, %p2873_p5 }
 0x32e   :  { %2881 = shalt.err (!%p2878_p7)
}
 0x32f   :  { %s2886_s3 = smov 128   ;;  %s2887_s15 = smov 8  }
 0x330   :  { %2275 = dma.vmem_to_hbm [thread:$0]  %s2270_s8, 512, %s3722_s7, [#allocation4], %s2886_s3, %s2886_s3, %s2887_s15  }
 0x331   :  { %2882 = dma.done.wait [#allocation4], 512  }
 0x332   :  { %2883 = vsyncadd [#allocation4], 4294966784 }
 0x333   :  { %2279 = vsyncpa [#allocation4], 1 }

</bundles_post_ra>
